<compile_context>
chip_gen: v6e
topology: v6e:2x2x1
jax: 0.10.0
libtpu: 0.0.40
codegen_flags: <defaults>
</compile_context>

<pallas_src>
import jax
import jax.numpy as jnp
import numpy as np
from jax.experimental import pallas as pl
from jax.experimental.pallas import tpu as pltpu

EPS = 1e-5          # PyTorch GroupNorm default eps
NUM_GROUPS = 4      # GroupNorm groups (original code uses 32; small channels here)


# ----------------------------- kernel helpers ------------------------------ #

def _group_norm_swish(a, gmask, gamma_l, beta_l, eps=EPS):
    """GroupNorm (one sample) + Swish on a lane-dense (H, W*C) activation.

    gmask:   (W*C, G) one-hot lane -> group membership (f32).
    gamma_l: (1, W*C) per-lane gamma (tiled over W); beta_l likewise.
    Group stats are gathered/scattered with tiny matmuls; the affine is folded
    into a single multiply-add with precomputed scale/shift.
    """
    Hh, L = a.shape
    G = gmask.shape[1]
    cnt = float(Hh * L) / float(G)                          # elems per group
    colsum = jnp.sum(a, axis=0, keepdims=True)              # (1, L)
    colsq = jnp.sum(a * a, axis=0, keepdims=True)           # (1, L)
    gsum = jnp.dot(colsum, gmask, preferred_element_type=jnp.float32)   # (1, G)
    gsq = jnp.dot(colsq, gmask, preferred_element_type=jnp.float32)     # (1, G)
    mean_g = gsum / cnt
    var_g = jnp.maximum(gsq / cnt - mean_g * mean_g, 0.0)   # clamp (f32 safety)
    inv_g = jax.lax.rsqrt(var_g + eps)                      # EUP
    dn = (((1,), (1,)), ((), ()))                           # contract the G axis
    mean_l = jax.lax.dot_general(mean_g, gmask, dn, preferred_element_type=jnp.float32)
    inv_l = jax.lax.dot_general(inv_g, gmask, dn, preferred_element_type=jnp.float32)
    scale = inv_l * gamma_l                                 # (1, L)
    shift = beta_l - mean_l * scale                         # (1, L)
    y = a * scale + shift                                   # single FMA on (H, L)
    return y * jax.nn.sigmoid(y)                            # Swish (sigmoid on EUP)


# --------------------------------- kernel ---------------------------------- #

def _resblock_kernel(x_ref, t_ref,
                     gm1_ref, g1_ref, b1_ref, w1_ref,
                     we_ref, be_ref,
                     gm2_ref, g2_ref, b2_ref, w2_ref,
                     wsk_ref, bsk_ref,
                     o_ref, pad1_ref, pad2_ref):
    H = x_ref.shape[1]
    Lin = x_ref.shape[2]                # W * Cin (lane-dense)
    Lout = o_ref.shape[2]               # W * Cout (lane-dense)
    bf16 = jnp.bfloat16

    x = x_ref[0]                                            # (H, Lin) f32

    # --- self.in_ : GroupNorm -> Swish (f32) ---
    h = _group_norm_swish(x, gm1_ref[...], g1_ref[...], b1_ref[...])

    # --- self.in_ : 3x3 conv as 3 band matmuls.  Only the H halo needs a
    #     padded scratch; the two halo rows are re-zeroed each step (cheap,
    #     and keeps the batch grid axis safely "parallel"). ---
    zin = jnp.zeros((1, Lin), pad1_ref.dtype)
    pad1_ref[0:1, :] = zin
    pad1_ref[H + 1:H + 2, :] = zin
    pad1_ref[1:H + 1, :] = h

    # --- self.emb : Swish -> Linear, lane-tiled weights -> (1, Lout) ---
    t = t_ref[0]                                            # (1, emb_dim) f32
    t = t * jax.nn.sigmoid(t)
    emb = jnp.dot(t, we_ref[...], preferred_element_type=jnp.float32) + be_ref[...]

    # conv1 accumulator starts from the first tap (no zeros init).
    h1 = jnp.dot(pad1_ref[0:H, :].astype(bf16), w1_ref[0],
                 preferred_element_type=jnp.float32)
    h1 = h1 + jnp.dot(pad1_ref[1:H + 1, :].astype(bf16), w1_ref[1],
                      preferred_element_type=jnp.float32)
    h1 = h1 + jnp.dot(pad1_ref[2:H + 2, :].astype(bf16), w1_ref[2],
                      preferred_element_type=jnp.float32)
    h1 = h1 + emb                                           # broadcast over H rows

    # --- self.out : GroupNorm -> Swish -> 3x3 conv ---
    h2 = _group_norm_swish(h1, gm2_ref[...], g2_ref[...], b2_ref[...])
    zout = jnp.zeros((1, Lout), pad2_ref.dtype)
    pad2_ref[0:1, :] = zout
    pad2_ref[H + 1:H + 2, :] = zout
    pad2_ref[1:H + 1, :] = h2

    # --- self.skip : 1x1 conv folded in as the accumulator init ---
    acc = jnp.dot(x.astype(bf16), wsk_ref[...],
                  preferred_element_type=jnp.float32) + bsk_ref[...]
    acc = acc + jnp.dot(pad2_ref[0:H, :].astype(bf16), w2_ref[0],
                        preferred_element_type=jnp.float32)
    acc = acc + jnp.dot(pad2_ref[1:H + 1, :].astype(bf16), w2_ref[1],
                        preferred_element_type=jnp.float32)
    acc = acc + jnp.dot(pad2_ref[2:H + 2, :].astype(bf16), w2_ref[2],
                        preferred_element_type=jnp.float32)

    o_ref[0] = acc.astype(o_ref.dtype)                      # lane-dense (H, Lout) store


# ---------------------- parameter packing (layout plumbing) ----------------- #

def _band_weights(w9, W):
    """(9, Ci, Co) taps -> (3, W*Ci, W*Co) block-Toeplitz band matrices.

    BigW[ky][(w+kx-1)*Ci + c, w*Co + o] = w9[ky*3+kx, c, o]; out-of-range W taps
    are clipped, which realizes the zero padding along W for free.
    """
    bands = []
    for ky in range(3):
        band = None
        for kx in range(3):
            blk = jnp.kron(jnp.eye(W, k=1 - kx, dtype=jnp.float32), w9[ky * 3 + kx])
            band = blk if band is None else band + blk
        bands.append(band)
    return jnp.stack(bands)


def pack_params(p, W, num_groups):
    Cin = p["gamma1"].shape[-1]
    Cout = p["gamma2"].shape[-1]
    assert Cin % num_groups == 0 and Cout % num_groups == 0, \
        "GroupNorm requires channels divisible by the group count"

    def lane_tile(v):                                       # (..., C) -> (1, W*C)
        return jnp.tile(jnp.reshape(v, (1, -1)), (1, W))

    def lane_group_mask(C):
        cg = C // num_groups
        base = (jnp.arange(C)[:, None] // cg
                == jnp.arange(num_groups)[None, :]).astype(jnp.float32)     # (C, G)
        return jnp.tile(base, (W, 1))                                       # (W*C, G)

    return {
        "gmask1": lane_group_mask(Cin),
        "gamma1": lane_tile(p["gamma1"]), "beta1": lane_tile(p["beta1"]),
        "gmask2": lane_group_mask(Cout),
        "gamma2": lane_tile(p["gamma2"]), "beta2": lane_tile(p["beta2"]),
        "bigw1": _band_weights(p["w_conv1"], W).astype(jnp.bfloat16),
        "bigw2": _band_weights(p["w_conv2"], W).astype(jnp.bfloat16),
        "w_emb": jnp.tile(p["w_emb"], (1, W)),              # (emb_dim, W*Cout)
        "b_emb": lane_tile(p["b_emb"]),
        "w_skip": jnp.kron(jnp.eye(W, dtype=jnp.float32),
                           p["w_skip"]).astype(jnp.bfloat16),   # (W*Cin, W*Cout)
        "b_skip": lane_tile(p["b_skip"]),
    }


# -------------------------------- wrapper ----------------------------------- #

def resblock_pallas(x_nhwc, t, plain_params, num_groups=NUM_GROUPS):
    N, H, W, Cin = x_nhwc.shape
    Cout = plain_params["gamma2"].shape[-1]
    emb_dim = t.shape[-1]
    Lin, Lout = W * Cin, W * Cout

    kp = pack_params(plain_params, W, num_groups)
    x_lane = x_nhwc.reshape(N, H, Lin)          # lane-dense: channels folded into W
    t3 = t.reshape(N, 1, emb_dim)

    def full(arr):                              # whole-array block, broadcast over grid
        nd = arr.ndim
        return pl.BlockSpec(arr.shape, lambda n, _nd=nd: (0,) * _nd)

    bcast = [kp["gmask1"], kp["gamma1"], kp["beta1"], kp["bigw1"],
             kp["w_emb"], kp["b_emb"],
             kp["gmask2"], kp["gamma2"], kp["beta2"], kp["bigw2"],
             kp["w_skip"], kp["b_skip"]]

    in_specs = [pl.BlockSpec((1, H, Lin), lambda n: (n, 0, 0)),       # x (lane-dense)
                pl.BlockSpec((1, 1, emb_dim), lambda n: (n, 0, 0))]   # t
    in_specs += [full(a) for a in bcast]

    out_lane = pl.pallas_call(
        _resblock_kernel,
        out_shape=jax.ShapeDtypeStruct((N, H, Lout), x_nhwc.dtype),
        grid=(N,),
        in_specs=in_specs,
        out_specs=pl.BlockSpec((1, H, Lout), lambda n: (n, 0, 0)),
        scratch_shapes=[
            pltpu.VMEM((H + 2, Lin), jnp.float32),    # H-halo pad for conv1
            pltpu.VMEM((H + 2, Lout), jnp.float32),   # H-halo pad for conv2
        ],
        compiler_params=pltpu.CompilerParams(
            dimension_semantics=("parallel",)),       # independent samples (v7x: 2 TCs)
    )(x_lane, t3, *bcast)

    return out_lane.reshape(N, H, W, Cout)


# ------------------------ deterministic parameter init ---------------------- #

def init_params(key, Cin, Cout, emb_dim):
    ks = jax.random.split(key, 10)
    # PyTorch-shaped parameters (OIHW convs, (out,in) linear), then convert.
    w_conv1_pt = jax.random.normal(ks[0], (Cout, Cin, 3, 3), jnp.float32) * 0.1
    w_conv2_pt = jax.random.normal(ks[1], (Cout, Cout, 3, 3), jnp.float32) * 0.1
    w_emb_pt = jax.random.normal(ks[2], (Cout, emb_dim), jnp.float32) * 0.1
    b_emb = jax.random.normal(ks[3], (Cout,), jnp.float32) * 0.1
    gamma1 = 1.0 + 0.1 * jax.random.normal(ks[4], (Cin,), jnp.float32)
    beta1 = 0.1 * jax.random.normal(ks[5], (Cin,), jnp.float32)
    gamma2 = 1.0 + 0.1 * jax.random.normal(ks[6], (Cout,), jnp.float32)
    beta2 = 0.1 * jax.random.normal(ks[7], (Cout,), jnp.float32)
    if Cin != Cout:
        w_skip_pt = jax.random.normal(ks[8], (Cout, Cin, 1, 1), jnp.float32) * 0.1
        b_skip = jax.random.normal(ks[9], (Cout,), jnp.float32) * 0.1
    else:  # Identity skip expressed as a 1x1 identity conv with zero bias
        w_skip_pt = jnp.eye(Cin, dtype=jnp.float32).reshape(Cout, Cin, 1, 1)
        b_skip = jnp.zeros((Cout,), jnp.float32)
    return {
        "w_conv1": jnp.transpose(w_conv1_pt, (2, 3, 1, 0)).reshape(9, Cin, Cout),
        "w_conv2": jnp.transpose(w_conv2_pt, (2, 3, 1, 0)).reshape(9, Cout, Cout),
        "w_emb": w_emb_pt.T,                       # (emb_dim, Cout)
        "b_emb": b_emb.reshape(1, Cout),
        "gamma1": gamma1.reshape(1, Cin),
        "beta1": beta1.reshape(1, Cin),
        "gamma2": gamma2.reshape(1, Cout),
        "beta2": beta2.reshape(1, Cout),
        "w_skip": w_skip_pt[:, :, 0, 0].T,         # (Cin, Cout)
        "b_skip": b_skip.reshape(1, Cout),
    }


# --------------------------- pure-JAX reference ----------------------------- #

def resblock_ref(x, t, p, G=NUM_GROUPS):
    def gn_swish(a, gamma, beta):
        N, H, W, C = a.shape
        ag = a.reshape(N, H, W, G, C // G)
        mean = ag.mean(axis=(1, 2, 4), keepdims=True)
        var = ag.var(axis=(1, 2, 4), keepdims=True)
        y = ((ag - mean) / jnp.sqrt(var + EPS)).reshape(N, H, W, C)
        y = y * gamma.reshape(1, 1, 1, C) + beta.reshape(1, 1, 1, C)
        return y * jax.nn.sigmoid(y)

    def conv3x3(a, w):
        N, H, W, C = a.shape
        ap = jnp.pad(a, ((0, 0), (1, 1), (1, 1), (0, 0)))
        out = 0.0
        for k in range(9):
            dy, dx = k // 3, k % 3
            out = out + jnp.einsum("nhwc,cd->nhwd", ap[:, dy:dy + H, dx:dx + W, :], w[k])
        return out

    h = conv3x3(gn_swish(x, p["gamma1"], p["beta1"]), p["w_conv1"])
    te = t * jax.nn.sigmoid(t)
    emb = te @ p["w_emb"] + p["b_emb"].reshape(-1)
    h = h + emb[:, None, None, :]
    out = conv3x3(gn_swish(h, p["gamma2"], p["beta2"]), p["w_conv2"])
    skip = jnp.einsum("nhwc,cd->nhwd", x, p["w_skip"]) + p["b_skip"].reshape(-1)
    return out + skip


# ---------------------------------- main ------------------------------------ #

if __name__ == "__main__":
    N, H, W = 2, 16, 16
    Cin, Cout, emb_dim = 8, 16, 32          # in_channels != out_channels -> conv skip
    # Lane-dense widths: W*Cin = 128, W*Cout = 256 (full 128-lane vregs).

    key = jax.random.PRNGKey(0)
    kx, kt, kp = jax.random.split(key, 3)
    x_nhwc = jax.random.normal(kx, (N, H, W, Cin), jnp.float32)   # NHWC layout
    t = jax.random.normal(kt, (N, emb_dim), jnp.float32)
    params = init_params(kp, Cin, Cout, emb_dim)

    out = jax.block_until_ready(resblock_pallas(x_nhwc, t, params))
    ref = jax.block_until_ready(resblock_ref(x_nhwc, t, params))

    # bf16 MXU operands (f32 accumulation) -> slightly looser tolerance than f32.
    np.testing.assert_allclose(np.asarray(out), np.asarray(ref), rtol=2e-2, atol=2e-2)

    print("KERNEL_OK")
</pallas_src>

<mosaic_0001>
module attributes {stable_mosaic.version = 11 : i64} {
  func.func @_resblock_kernel(%arg0: i32, %arg1: memref<1x16x128xf32, #tpu.memory_space<vmem>>, %arg2: memref<1x1x32xf32, #tpu.memory_space<vmem>>, %arg3: memref<128x4xf32, #tpu.memory_space<vmem>>, %arg4: memref<1x128xf32, #tpu.memory_space<vmem>>, %arg5: memref<1x128xf32, #tpu.memory_space<vmem>>, %arg6: memref<3x128x256xbf16, #tpu.memory_space<vmem>>, %arg7: memref<32x256xf32, #tpu.memory_space<vmem>>, %arg8: memref<1x256xf32, #tpu.memory_space<vmem>>, %arg9: memref<256x4xf32, #tpu.memory_space<vmem>>, %arg10: memref<1x256xf32, #tpu.memory_space<vmem>>, %arg11: memref<1x256xf32, #tpu.memory_space<vmem>>, %arg12: memref<3x256x256xbf16, #tpu.memory_space<vmem>>, %arg13: memref<128x256xbf16, #tpu.memory_space<vmem>>, %arg14: memref<1x256xf32, #tpu.memory_space<vmem>>, %arg15: memref<1x16x256xf32, #tpu.memory_space<vmem>>, %arg16: memref<18x128xf32, #tpu.memory_space<vmem>>, %arg17: memref<18x256xf32, #tpu.memory_space<vmem>>) attributes {dimension_semantics = [#tpu.dimension_semantics<parallel>], iteration_bounds = array<i64: 2>, scalar_prefetch = 0 : i64, scratch_operands = 2 : i64, tpu.core_type = #tpu.core_type<tc>, window_params = [{transform_indices = @transform_0, window_bounds = array<i64: 1, 16, 128>}, {transform_indices = @transform_1, window_bounds = array<i64: 1, 1, 32>}, {pipeline_mode = #tpu.pipeline_mode<synchronous>, transform_indices = @transform_2, window_bounds = array<i64: 128, 4>}, {pipeline_mode = #tpu.pipeline_mode<synchronous>, transform_indices = @transform_3, window_bounds = array<i64: 1, 128>}, {pipeline_mode = #tpu.pipeline_mode<synchronous>, transform_indices = @transform_4, window_bounds = array<i64: 1, 128>}, {pipeline_mode = #tpu.pipeline_mode<synchronous>, transform_indices = @transform_5, window_bounds = array<i64: 3, 128, 256>}, {pipeline_mode = #tpu.pipeline_mode<synchronous>, transform_indices = @transform_6, window_bounds = array<i64: 32, 256>}, {pipeline_mode = #tpu.pipeline_mode<synchronous>, transform_indices = @transform_7, window_bounds = array<i64: 1, 256>}, {pipeline_mode = #tpu.pipeline_mode<synchronous>, transform_indices = @transform_8, window_bounds = array<i64: 256, 4>}, {pipeline_mode = #tpu.pipeline_mode<synchronous>, transform_indices = @transform_9, window_bounds = array<i64: 1, 256>}, {pipeline_mode = #tpu.pipeline_mode<synchronous>, transform_indices = @transform_10, window_bounds = array<i64: 1, 256>}, {pipeline_mode = #tpu.pipeline_mode<synchronous>, transform_indices = @transform_11, window_bounds = array<i64: 3, 256, 256>}, {pipeline_mode = #tpu.pipeline_mode<synchronous>, transform_indices = @transform_12, window_bounds = array<i64: 128, 256>}, {pipeline_mode = #tpu.pipeline_mode<synchronous>, transform_indices = @transform_13, window_bounds = array<i64: 1, 256>}, {transform_indices = @transform_14, window_bounds = array<i64: 1, 16, 256>}]} {
    %c0 = arith.constant 0 : index
    %c0_0 = arith.constant 0 : index
    %c0_1 = arith.constant 0 : index
    %0 = vector.load %arg1[%c0, %c0_0, %c0_1] : memref<1x16x128xf32, #tpu.memory_space<vmem>>, vector<1x16x128xf32>
    %1 = vector.shape_cast %0 : vector<1x16x128xf32> to vector<16x128xf32>
    %c0_2 = arith.constant 0 : index
    %c0_3 = arith.constant 0 : index
    %2 = vector.load %arg3[%c0_2, %c0_3] : memref<128x4xf32, #tpu.memory_space<vmem>>, vector<128x4xf32>
    %c0_4 = arith.constant 0 : index
    %c0_5 = arith.constant 0 : index
    %3 = vector.load %arg4[%c0_4, %c0_5] : memref<1x128xf32, #tpu.memory_space<vmem>>, vector<1x128xf32>
    %c0_6 = arith.constant 0 : index
    %c0_7 = arith.constant 0 : index
    %4 = vector.load %arg5[%c0_6, %c0_7] : memref<1x128xf32, #tpu.memory_space<vmem>>, vector<1x128xf32>
    %cst = arith.constant dense<0.000000e+00> : vector<128xf32>
    %5 = vector.multi_reduction <add>, %1, %cst [0] : vector<16x128xf32> to vector<128xf32>
    %6 = vector.shape_cast %5 : vector<128xf32> to vector<1x128xf32>
    %7 = arith.mulf %1, %1 : vector<16x128xf32>
    %cst_8 = arith.constant dense<0.000000e+00> : vector<128xf32>
    %8 = vector.multi_reduction <add>, %7, %cst_8 [0] : vector<16x128xf32> to vector<128xf32>
    %9 = vector.shape_cast %8 : vector<128xf32> to vector<1x128xf32>
    %cst_9 = arith.constant dense<0.000000e+00> : vector<1x4xf32>
    %10 = tpu.matmul %6, %2, %cst_9 {dimension_numbers = #tpu.dot_dimension_numbers<[1], [0], [0], [1], [0, 0, 1, 1], [], []>} : vector<1x128xf32>, vector<128x4xf32>, vector<1x4xf32> -> vector<1x4xf32>
    %cst_10 = arith.constant dense<0.000000e+00> : vector<1x4xf32>
    %11 = tpu.matmul %9, %2, %cst_10 {dimension_numbers = #tpu.dot_dimension_numbers<[1], [0], [0], [1], [0, 0, 1, 1], [], []>} : vector<1x128xf32>, vector<128x4xf32>, vector<1x4xf32> -> vector<1x4xf32>
    %cst_11 = arith.constant 5.120000e+02 : f32
    %12 = vector.broadcast %cst_11 : f32 to vector<1x4xf32>
    %13 = arith.divf %10, %12 : vector<1x4xf32>
    %cst_12 = arith.constant 5.120000e+02 : f32
    %14 = vector.broadcast %cst_12 : f32 to vector<1x4xf32>
    %15 = arith.divf %11, %14 : vector<1x4xf32>
    %16 = arith.mulf %13, %13 : vector<1x4xf32>
    %17 = arith.subf %15, %16 : vector<1x4xf32>
    %cst_13 = arith.constant 0.000000e+00 : f32
    %18 = vector.broadcast %cst_13 : f32 to vector<1x4xf32>
    %19 = arith.maximumf %17, %18 : vector<1x4xf32>
    %cst_14 = arith.constant 9.99999974E-6 : f32
    %20 = vector.broadcast %cst_14 : f32 to vector<1x4xf32>
    %21 = arith.addf %19, %20 : vector<1x4xf32>
    %22 = math.rsqrt %21 : vector<1x4xf32>
    %cst_15 = arith.constant dense<0.000000e+00> : vector<1x128xf32>
    %23 = tpu.matmul %13, %2, %cst_15 {dimension_numbers = #tpu.dot_dimension_numbers<[1], [1], [0], [0], [0, 0, 1, 0], [], []>} : vector<1x4xf32>, vector<128x4xf32>, vector<1x128xf32> -> vector<1x128xf32>
    %cst_16 = arith.constant dense<0.000000e+00> : vector<1x128xf32>
    %24 = tpu.matmul %22, %2, %cst_16 {dimension_numbers = #tpu.dot_dimension_numbers<[1], [1], [0], [0], [0, 0, 1, 0], [], []>} : vector<1x4xf32>, vector<128x4xf32>, vector<1x128xf32> -> vector<1x128xf32>
    %25 = arith.mulf %24, %3 : vector<1x128xf32>
    %26 = arith.mulf %23, %25 : vector<1x128xf32>
    %27 = arith.subf %4, %26 : vector<1x128xf32>
    %28 = vector.broadcast %25 : vector<1x128xf32> to vector<16x128xf32>
    %29 = arith.mulf %1, %28 : vector<16x128xf32>
    %30 = vector.broadcast %27 : vector<1x128xf32> to vector<16x128xf32>
    %31 = arith.addf %29, %30 : vector<16x128xf32>
    %32 = arith.negf %31 : vector<16x128xf32>
    %33 = math.exp %32 : vector<16x128xf32>
    %cst_17 = arith.constant 1.000000e+00 : f32
    %34 = vector.broadcast %cst_17 : f32 to vector<16x128xf32>
    %35 = arith.addf %34, %33 : vector<16x128xf32>
    %36 = arith.divf %34, %35 : vector<16x128xf32>
    %37 = arith.mulf %31, %36 : vector<16x128xf32>
    %cst_18 = arith.constant 0.000000e+00 : f32
    %38 = vector.broadcast %cst_18 : f32 to vector<1x128xf32>
    %c0_19 = arith.constant 0 : index
    %c0_20 = arith.constant 0 : index
    %39 = vector.load %arg16[%c0_19, %c0_20] : memref<18x128xf32, #tpu.memory_space<vmem>>, vector<1x128xf32>
    tpu.vector_store %arg16[%c0_19, %c0_20], %38 {strides = array<i32>} : memref<18x128xf32, #tpu.memory_space<vmem>>, vector<1x128xf32>,
    %c17 = arith.constant 17 : index
    %c0_21 = arith.constant 0 : index
    %40 = vector.load %arg16[%c17, %c0_21] : memref<18x128xf32, #tpu.memory_space<vmem>>, vector<1x128xf32>
    tpu.vector_store %arg16[%c17, %c0_21], %38 {strides = array<i32>} : memref<18x128xf32, #tpu.memory_space<vmem>>, vector<1x128xf32>,
    %c1 = arith.constant 1 : index
    %c0_22 = arith.constant 0 : index
    %41 = vector.load %arg16[%c1, %c0_22] : memref<18x128xf32, #tpu.memory_space<vmem>>, vector<16x128xf32>
    tpu.vector_store %arg16[%c1, %c0_22], %37 {strides = array<i32>} : memref<18x128xf32, #tpu.memory_space<vmem>>, vector<16x128xf32>,
    %c0_23 = arith.constant 0 : index
    %c0_24 = arith.constant 0 : index
    %c0_25 = arith.constant 0 : index
    %42 = vector.load %arg2[%c0_23, %c0_24, %c0_25] : memref<1x1x32xf32, #tpu.memory_space<vmem>>, vector<1x1x32xf32>
    %43 = vector.shape_cast %42 : vector<1x1x32xf32> to vector<1x32xf32>
    %44 = arith.negf %43 : vector<1x32xf32>
    %45 = math.exp %44 : vector<1x32xf32>
    %cst_26 = arith.constant 1.000000e+00 : f32
    %46 = vector.broadcast %cst_26 : f32 to vector<1x32xf32>
    %47 = arith.addf %46, %45 : vector<1x32xf32>
    %48 = arith.divf %46, %47 : vector<1x32xf32>
    %49 = arith.mulf %43, %48 : vector<1x32xf32>
    %c0_27 = arith.constant 0 : index
    %c0_28 = arith.constant 0 : index
    %50 = vector.load %arg7[%c0_27, %c0_28] : memref<32x256xf32, #tpu.memory_space<vmem>>, vector<32x256xf32>
    %cst_29 = arith.constant dense<0.000000e+00> : vector<1x256xf32>
    %51 = tpu.matmul %49, %50, %cst_29 {dimension_numbers = #tpu.dot_dimension_numbers<[1], [0], [0], [1], [0, 0, 1, 1], [], []>} : vector<1x32xf32>, vector<32x256xf32>, vector<1x256xf32> -> vector<1x256xf32>
    %c0_30 = arith.constant 0 : index
    %c0_31 = arith.constant 0 : index
    %52 = vector.load %arg8[%c0_30, %c0_31] : memref<1x256xf32, #tpu.memory_space<vmem>>, vector<1x256xf32>
    %53 = arith.addf %51, %52 : vector<1x256xf32>
    %c0_32 = arith.constant 0 : index
    %c0_33 = arith.constant 0 : index
    %54 = vector.load %arg16[%c0_32, %c0_33] : memref<18x128xf32, #tpu.memory_space<vmem>>, vector<16x128xf32>
    %55 = arith.truncf %54 : vector<16x128xf32> to vector<16x128xbf16>
    %c0_34 = arith.constant 0 : index
    %c0_35 = arith.constant 0 : index
    %c0_36 = arith.constant 0 : index
    %56 = vector.load %arg6[%c0_34, %c0_35, %c0_36] : memref<3x128x256xbf16, #tpu.memory_space<vmem>>, vector<1x128x256xbf16>
    %57 = vector.shape_cast %56 : vector<1x128x256xbf16> to vector<128x256xbf16>
    %cst_37 = arith.constant dense<0.000000e+00> : vector<16x256xf32>
    %58 = tpu.matmul %55, %57, %cst_37 {dimension_numbers = #tpu.dot_dimension_numbers<[1], [0], [0], [1], [0, 0, 1, 1], [], []>} : vector<16x128xbf16>, vector<128x256xbf16>, vector<16x256xf32> -> vector<16x256xf32>
    %c1_38 = arith.constant 1 : index
    %c0_39 = arith.constant 0 : index
    %59 = vector.load %arg16[%c1_38, %c0_39] : memref<18x128xf32, #tpu.memory_space<vmem>>, vector<16x128xf32>
    %60 = arith.truncf %59 : vector<16x128xf32> to vector<16x128xbf16>
    %c1_40 = arith.constant 1 : index
    %c0_41 = arith.constant 0 : index
    %c0_42 = arith.constant 0 : index
    %61 = vector.load %arg6[%c1_40, %c0_41, %c0_42] : memref<3x128x256xbf16, #tpu.memory_space<vmem>>, vector<1x128x256xbf16>
    %62 = vector.shape_cast %61 : vector<1x128x256xbf16> to vector<128x256xbf16>
    %cst_43 = arith.constant dense<0.000000e+00> : vector<16x256xf32>
    %63 = tpu.matmul %60, %62, %cst_43 {dimension_numbers = #tpu.dot_dimension_numbers<[1], [0], [0], [1], [0, 0, 1, 1], [], []>} : vector<16x128xbf16>, vector<128x256xbf16>, vector<16x256xf32> -> vector<16x256xf32>
    %64 = arith.addf %58, %63 : vector<16x256xf32>
    %c2 = arith.constant 2 : index
    %c0_44 = arith.constant 0 : index
    %65 = vector.load %arg16[%c2, %c0_44] : memref<18x128xf32, #tpu.memory_space<vmem>>, vector<16x128xf32>
    %66 = arith.truncf %65 : vector<16x128xf32> to vector<16x128xbf16>
    %c2_45 = arith.constant 2 : index
    %c0_46 = arith.constant 0 : index
    %c0_47 = arith.constant 0 : index
    %67 = vector.load %arg6[%c2_45, %c0_46, %c0_47] : memref<3x128x256xbf16, #tpu.memory_space<vmem>>, vector<1x128x256xbf16>
    %68 = vector.shape_cast %67 : vector<1x128x256xbf16> to vector<128x256xbf16>
    %cst_48 = arith.constant dense<0.000000e+00> : vector<16x256xf32>
    %69 = tpu.matmul %66, %68, %cst_48 {dimension_numbers = #tpu.dot_dimension_numbers<[1], [0], [0], [1], [0, 0, 1, 1], [], []>} : vector<16x128xbf16>, vector<128x256xbf16>, vector<16x256xf32> -> vector<16x256xf32>
    %70 = arith.addf %64, %69 : vector<16x256xf32>
    %71 = vector.broadcast %53 : vector<1x256xf32> to vector<16x256xf32>
    %72 = arith.addf %70, %71 : vector<16x256xf32>
    %c0_49 = arith.constant 0 : index
    %c0_50 = arith.constant 0 : index
    %73 = vector.load %arg9[%c0_49, %c0_50] : memref<256x4xf32, #tpu.memory_space<vmem>>, vector<256x4xf32>
    %c0_51 = arith.constant 0 : index
    %c0_52 = arith.constant 0 : index
    %74 = vector.load %arg10[%c0_51, %c0_52] : memref<1x256xf32, #tpu.memory_space<vmem>>, vector<1x256xf32>
    %c0_53 = arith.constant 0 : index
    %c0_54 = arith.constant 0 : index
    %75 = vector.load %arg11[%c0_53, %c0_54] : memref<1x256xf32, #tpu.memory_space<vmem>>, vector<1x256xf32>
    %cst_55 = arith.constant dense<0.000000e+00> : vector<256xf32>
    %76 = vector.multi_reduction <add>, %72, %cst_55 [0] : vector<16x256xf32> to vector<256xf32>
    %77 = vector.shape_cast %76 : vector<256xf32> to vector<1x256xf32>
    %78 = arith.mulf %72, %72 : vector<16x256xf32>
    %cst_56 = arith.constant dense<0.000000e+00> : vector<256xf32>
    %79 = vector.multi_reduction <add>, %78, %cst_56 [0] : vector<16x256xf32> to vector<256xf32>
    %80 = vector.shape_cast %79 : vector<256xf32> to vector<1x256xf32>
    %cst_57 = arith.constant dense<0.000000e+00> : vector<1x4xf32>
    %81 = tpu.matmul %77, %73, %cst_57 {dimension_numbers = #tpu.dot_dimension_numbers<[1], [0], [0], [1], [0, 0, 1, 1], [], []>} : vector<1x256xf32>, vector<256x4xf32>, vector<1x4xf32> -> vector<1x4xf32>
    %cst_58 = arith.constant dense<0.000000e+00> : vector<1x4xf32>
    %82 = tpu.matmul %80, %73, %cst_58 {dimension_numbers = #tpu.dot_dimension_numbers<[1], [0], [0], [1], [0, 0, 1, 1], [], []>} : vector<1x256xf32>, vector<256x4xf32>, vector<1x4xf32> -> vector<1x4xf32>
    %cst_59 = arith.constant 1.024000e+03 : f32
    %83 = vector.broadcast %cst_59 : f32 to vector<1x4xf32>
    %84 = arith.divf %81, %83 : vector<1x4xf32>
    %cst_60 = arith.constant 1.024000e+03 : f32
    %85 = vector.broadcast %cst_60 : f32 to vector<1x4xf32>
    %86 = arith.divf %82, %85 : vector<1x4xf32>
    %87 = arith.mulf %84, %84 : vector<1x4xf32>
    %88 = arith.subf %86, %87 : vector<1x4xf32>
    %cst_61 = arith.constant 0.000000e+00 : f32
    %89 = vector.broadcast %cst_61 : f32 to vector<1x4xf32>
    %90 = arith.maximumf %88, %89 : vector<1x4xf32>
    %cst_62 = arith.constant 9.99999974E-6 : f32
    %91 = vector.broadcast %cst_62 : f32 to vector<1x4xf32>
    %92 = arith.addf %90, %91 : vector<1x4xf32>
    %93 = math.rsqrt %92 : vector<1x4xf32>
    %cst_63 = arith.constant dense<0.000000e+00> : vector<1x256xf32>
    %94 = tpu.matmul %84, %73, %cst_63 {dimension_numbers = #tpu.dot_dimension_numbers<[1], [1], [0], [0], [0, 0, 1, 0], [], []>} : vector<1x4xf32>, vector<256x4xf32>, vector<1x256xf32> -> vector<1x256xf32>
    %cst_64 = arith.constant dense<0.000000e+00> : vector<1x256xf32>
    %95 = tpu.matmul %93, %73, %cst_64 {dimension_numbers = #tpu.dot_dimension_numbers<[1], [1], [0], [0], [0, 0, 1, 0], [], []>} : vector<1x4xf32>, vector<256x4xf32>, vector<1x256xf32> -> vector<1x256xf32>
    %96 = arith.mulf %95, %74 : vector<1x256xf32>
    %97 = arith.mulf %94, %96 : vector<1x256xf32>
    %98 = arith.subf %75, %97 : vector<1x256xf32>
    %99 = vector.broadcast %96 : vector<1x256xf32> to vector<16x256xf32>
    %100 = arith.mulf %72, %99 : vector<16x256xf32>
    %101 = vector.broadcast %98 : vector<1x256xf32> to vector<16x256xf32>
    %102 = arith.addf %100, %101 : vector<16x256xf32>
    %103 = arith.negf %102 : vector<16x256xf32>
    %104 = math.exp %103 : vector<16x256xf32>
    %cst_65 = arith.constant 1.000000e+00 : f32
    %105 = vector.broadcast %cst_65 : f32 to vector<16x256xf32>
    %106 = arith.addf %105, %104 : vector<16x256xf32>
    %107 = arith.divf %105, %106 : vector<16x256xf32>
    %108 = arith.mulf %102, %107 : vector<16x256xf32>
    %cst_66 = arith.constant 0.000000e+00 : f32
    %109 = vector.broadcast %cst_66 : f32 to vector<1x256xf32>
    %c0_67 = arith.constant 0 : index
    %c0_68 = arith.constant 0 : index
    %110 = vector.load %arg17[%c0_67, %c0_68] : memref<18x256xf32, #tpu.memory_space<vmem>>, vector<1x256xf32>
    tpu.vector_store %arg17[%c0_67, %c0_68], %109 {strides = array<i32>} : memref<18x256xf32, #tpu.memory_space<vmem>>, vector<1x256xf32>,
    %c17_69 = arith.constant 17 : index
    %c0_70 = arith.constant 0 : index
    %111 = vector.load %arg17[%c17_69, %c0_70] : memref<18x256xf32, #tpu.memory_space<vmem>>, vector<1x256xf32>
    tpu.vector_store %arg17[%c17_69, %c0_70], %109 {strides = array<i32>} : memref<18x256xf32, #tpu.memory_space<vmem>>, vector<1x256xf32>,
    %c1_71 = arith.constant 1 : index
    %c0_72 = arith.constant 0 : index
    %112 = vector.load %arg17[%c1_71, %c0_72] : memref<18x256xf32, #tpu.memory_space<vmem>>, vector<16x256xf32>
    tpu.vector_store %arg17[%c1_71, %c0_72], %108 {strides = array<i32>} : memref<18x256xf32, #tpu.memory_space<vmem>>, vector<16x256xf32>,
    %113 = arith.truncf %1 : vector<16x128xf32> to vector<16x128xbf16>
    %c0_73 = arith.constant 0 : index
    %c0_74 = arith.constant 0 : index
    %114 = vector.load %arg13[%c0_73, %c0_74] : memref<128x256xbf16, #tpu.memory_space<vmem>>, vector<128x256xbf16>
    %cst_75 = arith.constant dense<0.000000e+00> : vector<16x256xf32>
    %115 = tpu.matmul %113, %114, %cst_75 {dimension_numbers = #tpu.dot_dimension_numbers<[1], [0], [0], [1], [0, 0, 1, 1], [], []>} : vector<16x128xbf16>, vector<128x256xbf16>, vector<16x256xf32> -> vector<16x256xf32>
    %c0_76 = arith.constant 0 : index
    %c0_77 = arith.constant 0 : index
    %116 = vector.load %arg14[%c0_76, %c0_77] : memref<1x256xf32, #tpu.memory_space<vmem>>, vector<1x256xf32>
    %117 = vector.broadcast %116 : vector<1x256xf32> to vector<16x256xf32>
    %118 = arith.addf %115, %117 : vector<16x256xf32>
    %c0_78 = arith.constant 0 : index
    %c0_79 = arith.constant 0 : index
    %119 = vector.load %arg17[%c0_78, %c0_79] : memref<18x256xf32, #tpu.memory_space<vmem>>, vector<16x256xf32>
    %120 = arith.truncf %119 : vector<16x256xf32> to vector<16x256xbf16>
    %c0_80 = arith.constant 0 : index
    %c0_81 = arith.constant 0 : index
    %c0_82 = arith.constant 0 : index
    %121 = vector.load %arg12[%c0_80, %c0_81, %c0_82] : memref<3x256x256xbf16, #tpu.memory_space<vmem>>, vector<1x256x256xbf16>
    %122 = vector.shape_cast %121 : vector<1x256x256xbf16> to vector<256x256xbf16>
    %cst_83 = arith.constant dense<0.000000e+00> : vector<16x256xf32>
    %123 = tpu.matmul %120, %122, %cst_83 {dimension_numbers = #tpu.dot_dimension_numbers<[1], [0], [0], [1], [0, 0, 1, 1], [], []>} : vector<16x256xbf16>, vector<256x256xbf16>, vector<16x256xf32> -> vector<16x256xf32>
    %124 = arith.addf %118, %123 : vector<16x256xf32>
    %c1_84 = arith.constant 1 : index
    %c0_85 = arith.constant 0 : index
    %125 = vector.load %arg17[%c1_84, %c0_85] : memref<18x256xf32, #tpu.memory_space<vmem>>, vector<16x256xf32>
    %126 = arith.truncf %125 : vector<16x256xf32> to vector<16x256xbf16>
    %c1_86 = arith.constant 1 : index
    %c0_87 = arith.constant 0 : index
    %c0_88 = arith.constant 0 : index
    %127 = vector.load %arg12[%c1_86, %c0_87, %c0_88] : memref<3x256x256xbf16, #tpu.memory_space<vmem>>, vector<1x256x256xbf16>
    %128 = vector.shape_cast %127 : vector<1x256x256xbf16> to vector<256x256xbf16>
    %cst_89 = arith.constant dense<0.000000e+00> : vector<16x256xf32>
    %129 = tpu.matmul %126, %128, %cst_89 {dimension_numbers = #tpu.dot_dimension_numbers<[1], [0], [0], [1], [0, 0, 1, 1], [], []>} : vector<16x256xbf16>, vector<256x256xbf16>, vector<16x256xf32> -> vector<16x256xf32>
    %130 = arith.addf %124, %129 : vector<16x256xf32>
    %c2_90 = arith.constant 2 : index
    %c0_91 = arith.constant 0 : index
    %131 = vector.load %arg17[%c2_90, %c0_91] : memref<18x256xf32, #tpu.memory_space<vmem>>, vector<16x256xf32>
    %132 = arith.truncf %131 : vector<16x256xf32> to vector<16x256xbf16>
    %c2_92 = arith.constant 2 : index
    %c0_93 = arith.constant 0 : index
    %c0_94 = arith.constant 0 : index
    %133 = vector.load %arg12[%c2_92, %c0_93, %c0_94] : memref<3x256x256xbf16, #tpu.memory_space<vmem>>, vector<1x256x256xbf16>
    %134 = vector.shape_cast %133 : vector<1x256x256xbf16> to vector<256x256xbf16>
    %cst_95 = arith.constant dense<0.000000e+00> : vector<16x256xf32>
    %135 = tpu.matmul %132, %134, %cst_95 {dimension_numbers = #tpu.dot_dimension_numbers<[1], [0], [0], [1], [0, 0, 1, 1], [], []>} : vector<16x256xbf16>, vector<256x256xbf16>, vector<16x256xf32> -> vector<16x256xf32>
    %136 = arith.addf %130, %135 : vector<16x256xf32>
    %c0_96 = arith.constant 0 : index
    %c0_97 = arith.constant 0 : index
    %c0_98 = arith.constant 0 : index
    %137 = vector.load %arg15[%c0_96, %c0_97, %c0_98] : memref<1x16x256xf32, #tpu.memory_space<vmem>>, vector<1x16x256xf32>
    %138 = vector.shape_cast %137 : vector<1x16x256xf32> to vector<16x256xf32>
    %139 = vector.shape_cast %136 : vector<16x256xf32> to vector<1x16x256xf32>
    tpu.vector_store %arg15[%c0_96, %c0_97, %c0_98], %139 {strides = array<i32>} : memref<1x16x256xf32, #tpu.memory_space<vmem>>, vector<1x16x256xf32>,
    return
  }
  func.func @transform_0(%arg0: i32) -> (i32, i32, i32) {
    %c0_i32 = arith.constant 0 : i32
    %c0_i32_0 = arith.constant 0 : i32
    %c0_i32_1 = arith.constant 0 : i32
    return %arg0, %c0_i32, %c0_i32_0 : i32, i32, i32
  }
  func.func @transform_1(%arg0: i32) -> (i32, i32, i32) {
    %c0_i32 = arith.constant 0 : i32
    %c0_i32_0 = arith.constant 0 : i32
    %c0_i32_1 = arith.constant 0 : i32
    return %arg0, %c0_i32, %c0_i32_0 : i32, i32, i32
  }
  func.func @transform_2(%arg0: i32) -> (i32, i32) {
    %c0_i32 = arith.constant 0 : i32
    %c0_i32_0 = arith.constant 0 : i32
    %c0_i32_1 = arith.constant 0 : i32
    return %c0_i32, %c0_i32_0 : i32, i32
  }
  func.func @transform_3(%arg0: i32) -> (i32, i32) {
    %c0_i32 = arith.constant 0 : i32
    %c0_i32_0 = arith.constant 0 : i32
    %c0_i32_1 = arith.constant 0 : i32
    return %c0_i32, %c0_i32_0 : i32, i32
  }
  func.func @transform_4(%arg0: i32) -> (i32, i32) {
    %c0_i32 = arith.constant 0 : i32
    %c0_i32_0 = arith.constant 0 : i32
    %c0_i32_1 = arith.constant 0 : i32
    return %c0_i32, %c0_i32_0 : i32, i32
  }
  func.func @transform_5(%arg0: i32) -> (i32, i32, i32) {
    %c0_i32 = arith.constant 0 : i32
    %c0_i32_0 = arith.constant 0 : i32
    %c0_i32_1 = arith.constant 0 : i32
    %c0_i32_2 = arith.constant 0 : i32
    return %c0_i32, %c0_i32_0, %c0_i32_1 : i32, i32, i32
  }
  func.func @transform_6(%arg0: i32) -> (i32, i32) {
    %c0_i32 = arith.constant 0 : i32
    %c0_i32_0 = arith.constant 0 : i32
    %c0_i32_1 = arith.constant 0 : i32
    return %c0_i32, %c0_i32_0 : i32, i32
  }
  func.func @transform_7(%arg0: i32) -> (i32, i32) {
    %c0_i32 = arith.constant 0 : i32
    %c0_i32_0 = arith.constant 0 : i32
    %c0_i32_1 = arith.constant 0 : i32
    return %c0_i32, %c0_i32_0 : i32, i32
  }
  func.func @transform_8(%arg0: i32) -> (i32, i32) {
    %c0_i32 = arith.constant 0 : i32
    %c0_i32_0 = arith.constant 0 : i32
    %c0_i32_1 = arith.constant 0 : i32
    return %c0_i32, %c0_i32_0 : i32, i32
  }
  func.func @transform_9(%arg0: i32) -> (i32, i32) {
    %c0_i32 = arith.constant 0 : i32
    %c0_i32_0 = arith.constant 0 : i32
    %c0_i32_1 = arith.constant 0 : i32
    return %c0_i32, %c0_i32_0 : i32, i32
  }
  func.func @transform_10(%arg0: i32) -> (i32, i32) {
    %c0_i32 = arith.constant 0 : i32
    %c0_i32_0 = arith.constant 0 : i32
    %c0_i32_1 = arith.constant 0 : i32
    return %c0_i32, %c0_i32_0 : i32, i32
  }
  func.func @transform_11(%arg0: i32) -> (i32, i32, i32) {
    %c0_i32 = arith.constant 0 : i32
    %c0_i32_0 = arith.constant 0 : i32
    %c0_i32_1 = arith.constant 0 : i32
    %c0_i32_2 = arith.constant 0 : i32
    return %c0_i32, %c0_i32_0, %c0_i32_1 : i32, i32, i32
  }
  func.func @transform_12(%arg0: i32) -> (i32, i32) {
    %c0_i32 = arith.constant 0 : i32
    %c0_i32_0 = arith.constant 0 : i32
    %c0_i32_1 = arith.constant 0 : i32
    return %c0_i32, %c0_i32_0 : i32, i32
  }
  func.func @transform_13(%arg0: i32) -> (i32, i32) {
    %c0_i32 = arith.constant 0 : i32
    %c0_i32_0 = arith.constant 0 : i32
    %c0_i32_1 = arith.constant 0 : i32
    return %c0_i32, %c0_i32_0 : i32, i32
  }
  func.func @transform_14(%arg0: i32) -> (i32, i32, i32) {
    %c0_i32 = arith.constant 0 : i32
    %c0_i32_0 = arith.constant 0 : i32
    %c0_i32_1 = arith.constant 0 : i32
    return %arg0, %c0_i32, %c0_i32_0 : i32, i32, i32
  }
}

</mosaic_0001>

<bundles_post_ra>
// kernel: tpu_custom_call.1
= control target key start
LH: loop header
LB: loop body
LE: loop exit
PB: predicated region body
PF: predicated region fallthrough
CT: control target
= control target key end

     0   :  { %s5514_s0 = inlined_call_operand.hbm [shape: f32[2,16,128], index: 0, kind: input, shape index: {}]   ;;  %s5515_s1 = inlined_call_operand.vmem [shape: f32[2,1,32], index: 1, kind: input, shape index: {}]   ;;  %s5516_s2 = inlined_call_operand.vmem [shape: f32[128,4], index: 2, kind: input, shape index: {}]   ;;  %s5517_s3 = inlined_call_operand.vmem [shape: f32[1,128], index: 3, kind: input, shape index: {}]   ;;  %s5518_s4 = inlined_call_operand.vmem [shape: f32[1,128], index: 4, kind: input, shape index: {}]   ;;  %s5519_s5 = inlined_call_operand.vmem [shape: bf16[3,128,256], index: 5, kind: input, shape index: {}]   ;;  %s5520_s6 = inlined_call_operand.hbm [shape: f32[32,256], index: 6, kind: input, shape index: {}]   ;;  %s5521_s7 = inlined_call_operand.vmem [shape: f32[1,256], index: 7, kind: input, shape index: {}]   ;;  %s5522_s8 = inlined_call_operand.vmem [shape: f32[256,4], index: 8, kind: input, shape index: {}]   ;;  %s5523_s9 = inlined_call_operand.vmem [shape: f32[1,256], index: 9, kind: input, shape index: {}]   ;;  %s5524_s10 = inlined_call_operand.vmem [shape: f32[1,256], index: 10, kind: input, shape index: {}]   ;;  %s5525_s11 = inlined_call_operand.hbm [shape: bf16[3,256,256], index: 11, kind: input, shape index: {}]   ;;  %s5526_s12 = inlined_call_operand.hbm [shape: bf16[128,256], index: 12, kind: input, shape index: {}]   ;;  %s5527_s13 = inlined_call_operand.vmem [shape: f32[1,256], index: 13, kind: input, shape index: {}]   ;;  %s5528_s14 = inlined_call_operand.hbm [shape: f32[2,16,256], index: 14, kind: output, shape index: {}]  }
   0x1   :  { %5543 = sst [smem:[#allocation21_spill]] %s5520_s6 }
   0x2   :  { %5544 = sst [smem:[#allocation22_spill]] %s5525_s11 }
   0x3   :  { %5545 = sst [smem:[#allocation23_spill]] %s5526_s12 }
   0x4   :  { %5546 = sst [smem:[#allocation24_spill]] %s5528_s14 }
   0x5   :  { %19 = vsyncpa [#allocation5], 0 }
   0x6   :  { %21 = vsyncpa [#allocation5 + $0x1], 0 }
   0x7   :  { %22 = vsyncpa [#allocation8], 0 }
   0x8   :  { %23 = vsyncpa [#allocation11], 0 }
   0x9   :  { %24 = vsyncpa [#allocation6], 0 }
   0xa   :  { %26 = vsyncpa [#allocation6 + $0x1], 0  ;;  %s4448_s29 = smov 0   ;;  %s4450_s30 = smov 0  }
   0xb   :  { %s4452_s15 = smov 0   ;;  %s4454_s16 = smov 0  }
   0xc LB: > { %5547 = sst [smem:[#allocation17_spill]] %s4344_s29  ;;  %s4469_s17 = sadd.s32 4294967295, %s4356_s16   ;;  %s4356_s16 = sphi %s4454_s16, %s5583_s16   ;;  %s4352_s15 = sphi %s4452_s15, %s5582_s15   ;;  %s4348_s30 = sphi %s4450_s30, %s5581_s30   ;;  %s4344_s29 = sphi %s4448_s29, %s5580_s29  }
   0xd   : > { %5548 = sst [smem:[#allocation18_spill]] %s4352_s15  ;;  %s3149_s18 = sadd.s32 4294967294, %s4356_s16  }
   0xe   : > { %p52_p0 = scmp.ne.s32.totalorder %s4348_s30, %s4344_s29  ;;  %p5530_p1 = scmp.eq.s32.totalorder %s4469_s17, 0 }
   0xf   : > { %p360_p3 = scmp.eq.s32.totalorder %s3149_s18, 1  ;;  %p3150_p5 = scmp.ge.s32.totalorder %s4356_s16, 1 }
  0x10   : > { %p4478_p4 = por %p5530_p1, %p52_p0  ;;  %p367_p7 = scmp.lt.s32.totalorder %s4356_s16, 3 }
  0x11   : > { %p4483_p6 = por %p360_p3, %p52_p0  ;;  %s4358_s22 = smov [#allocation7]  }
  0x12   : > { %s5549_s19 = scalar_select %p4478_p4, 1, 0 }
  0x13   : > { %s5550_s20 = scalar_select %p4483_p6, 1, 0 }
  0x14   : > { %p4488_p8 = pnand %p3150_p5, %p367_p7  ;;  %s391_s23 = sshll.u32 %s4358_s22, 4  ;;  %s392_s23 = int_to_ptr.vmem [resolvable:$true] %s391_s23 }
  0x15   : > { %5551 = sst [smem:[#allocation19_spill]] %s5550_s20  ;;  %s4359_s25 = smov [#allocation9]  }
  0x16   : > { %s5552_s21 = scalar_select %p4488_p8, 1, 0 }
  0x17   : > { %p3833_p9 = pneg %p4488_p8  ;;  %s416_s26 = sshll.u32 %s4359_s25, 4  ;;  %s417_s26 = int_to_ptr.vmem [resolvable:$true] %s416_s26 }
  0x18   : > { %s4189_s27 = scalar_lea.vmem %s392_s23, 1024  ;;  %p4197_p5 = scmp.lt.s32.totalorder %s392_s23, %s392_s23 }
  0x19   : > { %p4497_p11 = pnand %p3833_p9, %p5530_p1  ;;  %p4190_p13 = scmp.ne.s32.totalorder %s392_s23, %s4189_s27 }
  0x1a   : > { %p4198_p7 = scmp.lt.s32.totalorder %s4189_s27, %s4189_s27 }
  0x1b   : > { %p4180_p12 = pneg %p4497_p11 }
  0x1c   : > { %p4199_p10 = por %p4198_p7, %p4197_p5 }
  0x1d   : > { %p4192_p0 = pnand %p4190_p13, %p4180_p12 }
  0x1f   : > { %p4193_p3 = pneg %p4192_p0 }
  0x21   : > { %p4200_p9 = pnand %p4199_p10, %p4193_p3 }
  0x23   : > { %4203 = shalt.err (!%p4200_p9)
}
  0x24   : > { %s4360_s28 = smov 256   ;;  %s4361_s18 = smov 16  }
  0x25   : > { %s5554_s6 = sld [smem:[#allocation21_spill]]  ;;  %s4215_s20 = scalar_lea.vmem %s417_s26, 12288 }
  0x26   : > { %p4216_p1 = scmp.ne.s32.totalorder %s417_s26, %s4215_s20  ;;  %p4223_p2 = scmp.lt.s32.totalorder %s417_s26, %s417_s26 }
  0x27   : > { %p4224_p6 = scmp.lt.s32.totalorder %s4215_s20, %s4215_s20 }
  0x28   : > { %p4218_p13 = pnand %p4216_p1, %p4180_p12 }
  0x29   : > { %p4225_p5 = por %p4224_p6, %p4223_p2 }
  0x2a   : > { %p4219_p0 = pneg %p4218_p13 }
  0x2b   : > { %3836 = dma.hbm_to_vmem [thread:$0]  (!%p4497_p11), %s5554_s6, 1024, %s392_s23, [#allocation8], %s4360_s28, %s4360_s28, %s4361_s18  }
  0x2c   : > { %p4226_p10 = pnand %p4225_p5, %p4219_p0 }
  0x2e   : > { %4229 = shalt.err (!%p4226_p10)
}
  0x2f   : > { %s5533_s27 = smov 128   ;;  %s5534_s29 = smov 8  }
  0x30   : > { %s5555_s11 = sld [smem:[#allocation22_spill]]  ;;  %s4364_s18 = smov [#allocation10]  }
  0x31   : > { %s429_s22 = sshll.u32 %s4364_s18, 4  ;;  %s4523_s20 = sadd.s32 1, %s4356_s16   ;;  %s430_s22 = int_to_ptr.vmem [resolvable:$true] %s429_s22 }
  0x32   : > { %s4241_s25 = scalar_lea.vmem %s430_s22, 2048  ;;  %p4249_p3 = scmp.lt.s32.totalorder %s430_s22, %s430_s22 }
  0x33   : > { %p4242_p1 = scmp.ne.s32.totalorder %s430_s22, %s4241_s25  ;;  %p4250_p7 = scmp.lt.s32.totalorder %s4241_s25, %s4241_s25 }
  0x35   : > { %p4244_p2 = pnand %p4242_p1, %p4180_p12  ;;  %p4251_p9 = por %p4250_p7, %p4249_p3 }
  0x36   : > { %3839 = dma.hbm_to_vmem [thread:$0]  (!%p4497_p11), %s5555_s11, 12288, %s417_s26, [#allocation8], %s5533_s27, %s5533_s27, %s5534_s29  }
  0x37   : > { %p4245_p6 = pneg %p4244_p2 }
  0x39   : > { %p4252_p13 = pnand %p4251_p9, %p4245_p6 }
  0x3b   : > { %4255 = shalt.err (!%p4252_p13)
}
  0x3c   : > { %s5556_s12 = sld [smem:[#allocation23_spill]]  ;;  %s36_s28 = ssub.s32 %s4356_s16, %s4523_s20 }
  0x3d   : > { %s39_s24 = sadd.s32 1, %s4352_s15  ;;  %p37_p12 = scmp.eq.s32.totalorder %s36_s28, 0 }
  0x3e   : > { %p46_p0 = scmp.ne.s32.totalorder %s4352_s15, %s4348_s30  ;;  %p47_p5 = scmp.eq.s32.totalorder %s4356_s16, 0 }
  0x3f   : > { %p3854_p10 = scmp.lt.s32.totalorder %s4356_s16, 2  ;;  %p5558_p2 = scmp.eq.s32.totalorder %s4469_s17, 1 }
  0x40   : > { %s4544_s18 = scalar_select %p37_p12, %s4352_s15, %s39_s24  }
  0x41   : > { %p48_p1 = por %p47_p5, %p46_p0  ;;  %p4548_p6 = por %p5558_p2, %p46_p0 }
  0x42   : > { %3842 = dma.hbm_to_vmem [thread:$0]  (!%p4497_p11), %s5556_s12, 2048, %s430_s22, [#allocation11], %s5533_s27, %s5533_s27, %s5534_s29  }
  0x43   : > { %5557 = sst [smem:[#allocation20_spill]] %s4544_s18  ;;  %s446_s26 = sand.u32 1, %s4352_s15  }
  0x44   : > { %s5559_s25 = scalar_select %p4548_p6, 1, 0 }
  0x45   : > { %s3469_s23 = sshll.u32 %s4356_s16, 8  ;;  %s3155_s6 = sshll.u32 %s446_s26, 4 }
  0x46   : > { %s4557_s22 = scalar_lea.hbm %s5514_s0, %s3469_s23  ;;  %s450_s28 = scalar_lea.vmem [#allocation4], %s3155_s6 }
  0x47   : > { %s457_s24 = sshll.u32 %s450_s28, 4  ;;  %p4559_p11 = pnand %p3854_p10, %p48_p1  ;;  %s4563_s24 = int_to_ptr.vmem [resolvable:$true] %s457_s24 }
  0x48   : > { %s4565_s29 = scalar_lea.sflag [#allocation5], %s446_s26  ;;  %s4256_s12 = scalar_lea.hbm %s4557_s22, 256 }
  0x49   : > { %p4257_p3 = scmp.ne.s32.totalorder %s4557_s22, %s4256_s12  ;;  %p4258_p7 = pneg %p4559_p11 }
  0x4a   : > { %s4261_s6 = scalar_lea.hbm %s5514_s0, 512  ;;  %p4262_p12 = scmp.lt.s32.totalorder %s4557_s22, %s5514_s0 }
  0x4b   : > { %p4259_p9 = pnand %p4258_p7, %p4257_p3  ;;  %p4263_p0 = scmp.lt.s32.totalorder %s4261_s6, %s4256_s12 }
  0x4d   : > { %p4260_p13 = pneg %p4259_p9  ;;  %p4264_p5 = por %p4263_p0, %p4262_p12 }
  0x4f   : > { %p4265_p10 = pnand %p4264_p5, %p4260_p13 }
  0x51   : > { %4268 = shalt.err (!%p4265_p10)
}
  0x52   : > { %s4269_s26 = scalar_lea.vmem %s4563_s24, 256  ;;  %s4365_s18 = smov [#allocation4]  }
  0x53   : > { %p4270_p1 = scmp.ne.s32.totalorder %s4563_s24, %s4269_s26  ;;  %s4274_s15 = sshll.u32 %s4365_s18, 4  ;;  %s4275_s15 = int_to_ptr.vmem [resolvable:$false] %s4274_s15 }
  0x54   : > { %s4276_s11 = scalar_lea.vmem %s4275_s15, 512  ;;  %p4277_p9 = scmp.lt.s32.totalorder %s4563_s24, %s4275_s15 }
  0x55   : > { %p4272_p2 = pnand %p4270_p1, %p4258_p7  ;;  %p4278_p6 = scmp.lt.s32.totalorder %s4276_s11, %s4269_s26 }
  0x57   : > { %p4273_p3 = pneg %p4272_p2  ;;  %p4279_p4 = por %p4278_p6, %p4277_p9 }
  0x59   : > { %p4280_p8 = pnand %p4279_p4, %p4273_p3 }
  0x5b   : > { %4283 = shalt.err (!%p4280_p8)
}
  0x5c   : > { %s5561_s12 = smov 8   ;;  %s5562_s14 = smov 128  }
  0x5d   : > { %3846 = dma.hbm_to_vmem [thread:$0]  (!%p4559_p11), %s4557_s22, 256, %s4563_s24, %s4565_s29, %s5562_s14, %s5562_s14, %s5561_s12  }
  0x5e   : > { %p5563_p7 = scmp.ne.s32.totalorder %s5552_s21, 0 }
  0x5f   : > { %s4592_s18 = sand.u32 (!%p5563_p7), 1, %s4348_s30   ;;  %p5564_p4 = scmp.ne.s32.totalorder (!%p5563_p7), %s5549_s19, 0 }
  0x60   : > { %475 = sbr.rel (%p5563_p7) target bundleno = 1640 (0x668), region = 76  ;;  %s3159_s15 = sshll.u32 (!%p5563_p7), %s4592_s18, 4 }
  0x61   : > { %s478_s6 = scalar_lea.sflag (!%p5563_p7), [#allocation5], %s4592_s18  ;;  %s4596_s23 = scalar_lea.vmem (!%p5563_p7), [#allocation4], %s3159_s15 }
  0x65   : > { %4327 = dma.done.wait (%p5564_p4), %s478_s6, 256  }
  0x66   : > { %4329 = vsyncadd (%p5564_p4), %s478_s6, 4294967040  ;;  %p5565_p8 = scmp.eq.s32.totalorder %s4469_s17, 0 }
  0x68   : > { %4331 = dma.done.wait (%p5565_p8), [#allocation8], 13312   ;;  %p5566_p6 = pmov %p5565_p8 }
  0x6a   : > { %4333 = vsyncadd (%p5566_p6), [#allocation8], 4294953984  ;;  %p5567_p11 = pmov %p5566_p6 }
  0x6b   : > { %p5568_p13 = pmov %p5566_p6 }
  0x6c   : > { %4335 = dma.done.wait (%p5567_p11), [#allocation11], 2048  }
  0x6d   : > { %4337 = vsyncadd (%p5568_p13), [#allocation11], 4294965248  ;;  %v5539_v0 = vmov 0.0   ;;  %vm4367_vm0 = vmmov 0   ;;  %v4621_v1 = vld [vmem:[%s5516_s2 + $0x78] sm:$0xff]  ;;  %v4626_v2 = vld [vmem:[%s5516_s2 + $0x70] sm:$0xff] }
  0x6e   : > { %3677 = vmatprep.subr.mxu0 %v5539_v0  ;;  %955 = vst [vmem:[#allocation2] sm:$0x1] %v5539_v0  ;;  %956 = vst [vmem:[#allocation2 + $0x11] sm:$0x1] %v5539_v0  ;;  %3709 = vmatprep.mubr.msk.f32.mxu0 %vm4367_vm0, %v5539_v0  ;;  %vm729_vm1 = vcmask 31744   ;;  %v4635_v3 = vld [vmem:[%s5516_s2 + $0x68] sm:$0xff] }
  0x6f   : > { %3782 = vmatprep.subr.mxu1 %v5539_v0  ;;  %3814 = vmatprep.mubr.msk.f32.mxu1 %vm4367_vm0, %v5539_v0  ;;  %v4643_v4 = vld [vmem:[%s5516_s2 + $0x60] sm:$0xff]  ;;  %v4649_v5 = vld [vmem:[%s5516_s2 + $0x58] sm:$0xff]  ;;  %v4663_v8 = vld [vmem:[%s5516_s2 + $0x50] sm:$0xff]  ;;  %p541_p12 = scmp.lt.s32.totalorder %s4469_s17, 1  ;;  %vm987_vm2 = vcmask 261120   ;;  %vm2066_vm4 = vcmask 1040384  }
  0x70   : > { %3678 = vmatpush3.msra.mxu0 %v4621_v1  ;;  %3783 = vmatpush3.xpose.msk.msra.mxu1 %vm729_vm1, %v4621_v1  ;;  %v4652_v6 = vld [vmem:[%s4596_s23] sm:$0xff]  ;;  %v4655_v7 = vld [vmem:[%s4596_s23 + $0x8] sm:$0xff]  ;;  %vm2804_vm5 = vcmask 1046528   ;;  %vm2525_vm6 = vsmask.f32 7424  ;;  %s3163_s6 = sshll.u32 %s4592_s18, 5 }
  0x71   : > { %3679 = vmatprep.subr.mxu0 %v5539_v0  ;;  %3784 = vmatprep.subr.mxu1 %v5539_v0  ;;  %v565_v9 = vadd.f32 %v4655_v7, %v4652_v6  ;;  %v4673_v10 = vld [vmem:[%s5516_s2 + $0x48] sm:$0xff]  ;;  %v4682_v12 = vld [vmem:[%s5516_s2 + $0x40] sm:$0xff]  ;;  %v4690_v13 = vld [vmem:[%s5516_s2 + $0x38] sm:$0xff]  ;;  %v572_v26 = vmul.f32 %v4652_v6, %v4652_v6  ;;  %v573_v27 = vmul.f32 %v4655_v7, %v4655_v7  ;;  %s542_s28 = scalar_select %p541_p12, %s4469_s17, 1 }
  0x72   : > { %3680 = vmatpush3.msra.mxu0 %v4626_v2  ;;  %v4699_v15 = vld [vmem:[%s5516_s2 + $0x30] sm:$0xff]  ;;  %v4707_v16 = vld [vmem:[%s5516_s2 + $0x28] sm:$0xff]  ;;  %v4716_v18 = vld [vmem:[%s5516_s2 + $0x20] sm:$0xff]  ;;  %s540_s29 = scalar_lea.vmem [#allocation12], %s3163_s6  ;;  %s3470_s21 = sshll.u32 %s4469_s17, 9 }
  0x73   : > { %3681 = vmatprep.subr.mxu0 %v5539_v0  ;;  %v566_v11 = vrot.slane %v565_v9, 4  ;;  %v4724_v19 = vld [vmem:[%s5516_s2 + $0x18] sm:$0xff]  ;;  %v4733_v21 = vld [vmem:[%s5516_s2 + $0x10] sm:$0xff]  ;;  %v4741_v22 = vld [vmem:[%s5516_s2 + $0x8] sm:$0xff]  ;;  %v574_v28 = vadd.f32 %v573_v27, %v572_v26  ;;  %s543_s12 = scalar_lea.vmem %s5515_s1, %s542_s28  ;;  %s3038_s19 = sshll.u32 %s540_s29, 4  ;;  %s5466_s19 = int_to_ptr.vmem [resolvable:$true] %s3038_s19 }
  0x74   : > { %3682 = vmatpush3.msra.mxu0 %v4635_v3  ;;  %3785 = vmatpush3.xpose.msk.msra.mxu1 %vm729_vm1, %v4626_v2  ;;  %v4750_v24 = vld [vmem:[%s5516_s2] sm:$0xff]  ;;  %v3906_v50 = vld [vmem:[%s5519_s5 + $0xf4] ss:$8 sps:$4 sm:$0xff]   ;;  %v3904_v51 = vld [vmem:[%s5519_s5 + $0xf0] ss:$8 sps:$4 sm:$0xff]   ;;  %s5572_s24 = sld [smem:[#allocation24_spill]] }
  0x75   : > { %3683 = vmatprep.subr.mxu0 %v5539_v0  ;;  %3786 = vmatprep.subr.mxu1 %v5539_v0  ;;  %v567_v14 = vadd.f32 %v566_v11, %v565_v9  ;;  %v575_v29 = vrot.slane %v574_v28, 4  ;;  %v959_v46 = vld [vmem:[%s543_s12] sm:$0x1]  ;;  %v973_v53 = vld [vmem:[#allocation7 + $0x30] sm:$0xff]  ;;  %v972_v54 = vld [vmem:[#allocation7 + $0x28] sm:$0xff]  ;;  %s4284_s17 = scalar_lea.vmem %s5466_s19, 512 }
  0x76   : > { %3684 = vmatpush3.msra.mxu0 %v4643_v4  ;;  %v3200_v47 = vmul.f32 -1.442695, %v959_v46  ;;  %v974_v52 = vld [vmem:[#allocation7 + $0x38] sm:$0xff]  ;;  %v971_v56 = vld [vmem:[#allocation7 + $0x20] sm:$0xff]  ;;  %v969_v59 = vld [vmem:[#allocation7 + $0x10] sm:$0xff]  ;;  %p4285_p0 = scmp.ne.s32.totalorder %s5466_s19, %s4284_s17  ;;  %p5573_p5 = scmp.ne.s32.totalorder %s5559_s25, 0 }
  0x77   : > { %3685 = vmatprep.subr.mxu0 %v5539_v0  ;;  %v568_v17 = vrot.slane %v567_v14, 2  ;;  %v576_v30 = vadd.f32 %v575_v29, %v574_v28  ;;  %v3912_v55 = vld [vmem:[%s5519_s5 + $0xe4] ss:$8 sps:$4 sm:$0xff]   ;;  %v3910_v57 = vld [vmem:[%s5519_s5 + $0xe0] ss:$8 sps:$4 sm:$0xff]   ;;  %v968_v60 = vld [vmem:[#allocation7 + $0x8] sm:$0xff] }
  0x78   : > { %3686 = vmatpush3.msra.mxu0 %v4649_v5  ;;  %3787 = vmatpush3.xpose.msk.msra.mxu1 %vm729_vm1, %v4635_v3  ;;  %v970_v58 = vld [vmem:[#allocation7 + $0x18] sm:$0xff]  ;;  %v3918_v61 = vld [vmem:[%s5519_s5 + $0xd4] ss:$8 sps:$4 sm:$0xff]   ;;  %v967_v63 = vld [vmem:[#allocation7] sm:$0xff]  ;;  %p4286_p10 = pnand %p4285_p0, %p5573_p5  ;;  %s4370_s26 = smov [#allocation12]  }
  0x79   : > { %3687 = vmatprep.subr.mxu0 %v5539_v0  ;;  %3788 = vmatprep.subr.mxu1 %v5539_v0  ;;  %v569_v20 = vadd.f32 %v568_v17, %v567_v14  ;;  %v577_v31 = vrot.slane %v576_v30, 2  ;;  %v3922_v9 = vld [vmem:[%s5519_s5 + $0xc0] ss:$8 sps:$4 sm:$0xff]   ;;  %v3930_v11 = vld [vmem:[%s5519_s5 + $0xb4] ss:$8 sps:$4 sm:$0xff]   ;;  %s4288_s11 = sshll.u32 %s4370_s26, 4  ;;  %s4289_s11 = int_to_ptr.vmem [resolvable:$false] %s4288_s11 }
  0x7a   : > { %3688 = vmatpush3.msra.mxu0 %v4663_v8  ;;  %v3919_v14 = vld [vmem:[%s5519_s5 + $0x50] ss:$8 sps:$4 sm:$0xff]   ;;  %v3934_v17 = vld [vmem:[%s5519_s5 + $0xa0] ss:$8 sps:$4 sm:$0xff]   ;;  %v3954_v27 = vld [vmem:[%s5519_s5 + $0x174] ss:$8 sps:$4 sm:$0xff]   ;;  %s5471_s28 = scalar_lea.hbm %s5572_s24, %s3470_s21  ;;  %p4287_p1 = pneg %p4286_p10 }
  0x7b   : > { %3689 = vmatprep.subr.mxu0 %v5539_v0  ;;  %v570_v23 = vrot.slane %v569_v20, 1  ;;  %v578_v32 = vadd.f32 %v577_v31, %v576_v30  ;;  %v3937_v26 = vld [vmem:[%s5519_s5 + $0x20] ss:$8 sps:$4 sm:$0xff]   ;;  %v3943_v28 = vld [vmem:[%s5519_s5 + $0x10] ss:$8 sps:$4 sm:$0xff]   ;;  %v5542_v31 = vmov 0   ;;  %p4291_p2 = scmp.lt.s32.totalorder %s5466_s19, %s4289_s11 }
  0x7c   : > { %3690 = vmatpush3.msra.mxu0 %v4673_v10  ;;  %3789 = vmatpush3.xpose.msk.msra.mxu1 %vm729_vm1, %v4643_v4  ;;  %v3945_v29 = vld [vmem:[%s5519_s5 + $0x14] ss:$8 sps:$4 sm:$0xff]   ;;  %v3951_v30 = vld [vmem:[%s5519_s5 + $0x4] ss:$8 sps:$4 sm:$0xff]   ;;  %s4290_s12 = scalar_lea.vmem %s4289_s11, 1024 }
  0x7d   : > { %3691 = vmatprep.subr.mxu0 %v5539_v0  ;;  %3790 = vmatprep.subr.mxu1 %v5539_v0  ;;  %v571_v25 = vadd.f32 %v570_v23, %v569_v20  ;;  %v579_v33 = vrot.slane %v578_v32, 1  ;;  %v3933_v20 = vld [vmem:[%s5519_s5 + $0x34] ss:$8 sps:$4 sm:$0xff]   ;;  %v3948_v23 = vld [vmem:[%s5519_s5 + $0x84] ss:$8 sps:$4 sm:$0xff]   ;;  %p4292_p3 = scmp.lt.s32.totalorder %s4290_s12, %s4284_s17 }
  0x7e   : > { %3692 = vmatpush3.msra.mxu0 %v4682_v12 }
  0x7f   : > { %3693 = vmatprep.subr.mxu0 %v5539_v0  ;;  %v580_v34 = vadd.f32 %v579_v33, %v578_v32  ;;  %v3949_v32 = vld [vmem:[%s5519_s5] ss:$8 sps:$4 sm:$0xff]   ;;  %p4293_p9 = por %p4292_p3, %p4291_p2 }
  0x80   : > { %3694 = vmatpush3.msra.mxu0 %v4690_v13  ;;  %3791 = vmatpush3.xpose.msk.msra.mxu1 %vm729_vm1, %v4649_v5 }
  0x81   : > { %3695 = vmatprep.subr.mxu0 %v5539_v0  ;;  %3792 = vmatprep.subr.mxu1 %v5539_v0  ;;  %p4294_p7 = pnand %p4293_p9, %p4287_p1 }
  0x82   : > { %3696 = vmatpush3.msra.mxu0 %v4699_v15 }
  0x83   : > { %3697 = vmatprep.subr.mxu0 %v5539_v0 }
  0x84   : > { %3698 = vmatpush3.msra.mxu0 %v4707_v16  ;;  %3793 = vmatpush3.xpose.msk.msra.mxu1 %vm729_vm1, %v4663_v8 }
  0x85   : > { %3699 = vmatprep.subr.mxu0 %v5539_v0  ;;  %3794 = vmatprep.subr.mxu1 %v5539_v0 }
  0x86   : > { %3700 = vmatpush3.msra.mxu0 %v4716_v18 }
  0x87   : > { %3701 = vmatprep.subr.mxu0 %v5539_v0 }
  0x88   : > { %3702 = vmatpush3.msra.mxu0 %v4724_v19  ;;  %3795 = vmatpush3.xpose.msk.msra.mxu1 %vm729_vm1, %v4673_v10 }
  0x89   : > { %3703 = vmatprep.subr.mxu0 %v5539_v0  ;;  %3796 = vmatprep.subr.mxu1 %v5539_v0 }
  0x8a   : > { %3704 = vmatpush3.msra.mxu0 %v4733_v21 }
  0x8b   : > { %3705 = vmatprep.subr.mxu0 %v5539_v0 }
  0x8c   : > { %3706 = vmatpush3.msra.mxu0 %v4741_v22  ;;  %3797 = vmatpush3.xpose.msk.msra.mxu1 %vm729_vm1, %v4682_v12 }
  0x8d   : > { %3707 = vmatprep.subr.mxu0 %v5539_v0  ;;  %3798 = vmatprep.subr.mxu1 %v5539_v0 }
  0x8e   : > { %3708 = vmatpush3.msra.mxu0 %v4750_v24 }
  0x8f   : > { %3710 = vmatmul.mubr.f32.vlgmr.msra.gmra.mxu0 %v571_v25  ;;  %3712 = vmatprep.subr.mxu0 %v5539_v0  ;;  %v3946_v25 = vld [vmem:[%s5519_s5 + $0x80] ss:$8 sps:$4 sm:$0xff]  }
  0x90   : > { %3713 = vmatpush3.msra.mxu0 %v4621_v1  ;;  %3744 = vmatprep.mubr.msk.f32.mxu0 %vm4367_vm0, %v5539_v0 }
  0x91   : > { %3714 = vmatprep.subr.mxu0 %v5539_v0  ;;  %3799 = vmatpush3.xpose.msk.msra.mxu1 %vm729_vm1, %v4690_v13 }
  0x92   : > { %3715 = vmatpush3.msra.mxu0 %v4626_v2  ;;  %3800 = vmatprep.subr.mxu1 %v5539_v0 }
  0x93   : > { %3716 = vmatprep.subr.mxu0 %v5539_v0 }
  0x94   : > { %3717 = vmatpush3.msra.mxu0 %v4635_v3 }
  0x95   : > { %3718 = vmatprep.subr.mxu0 %v5539_v0  ;;  %3801 = vmatpush3.xpose.msk.msra.mxu1 %vm729_vm1, %v4699_v15 }
  0x96   : > { %3719 = vmatpush3.msra.mxu0 %v4643_v4  ;;  %3802 = vmatprep.subr.mxu1 %v5539_v0 }
  0x97   : > { %3720 = vmatprep.subr.mxu0 %v5539_v0 }
  0x98   : > { %3721 = vmatpush3.msra.mxu0 %v4649_v5 }
  0x99   : > { %3722 = vmatprep.subr.mxu0 %v5539_v0  ;;  %3803 = vmatpush3.xpose.msk.msra.mxu1 %vm729_vm1, %v4707_v16 }
  0x9a   : > { %3723 = vmatpush3.msra.mxu0 %v4663_v8  ;;  %3804 = vmatprep.subr.mxu1 %v5539_v0 }
  0x9b   : > { %3724 = vmatprep.subr.mxu0 %v5539_v0 }
  0x9c   : > { %3725 = vmatpush3.msra.mxu0 %v4673_v10 }
  0x9d   : > { %3726 = vmatprep.subr.mxu0 %v5539_v0  ;;  %3805 = vmatpush3.xpose.msk.msra.mxu1 %vm729_vm1, %v4716_v18 }
  0x9e   : > { %3727 = vmatpush3.msra.mxu0 %v4682_v12  ;;  %3806 = vmatprep.subr.mxu1 %v5539_v0 }
  0x9f   : > { %3728 = vmatprep.subr.mxu0 %v5539_v0 }
  0xa0   : > { %3729 = vmatpush3.msra.mxu0 %v4690_v13 }
  0xa1   : > { %3730 = vmatprep.subr.mxu0 %v5539_v0  ;;  %3807 = vmatpush3.xpose.msk.msra.mxu1 %vm729_vm1, %v4724_v19 }
  0xa2   : > { %3731 = vmatpush3.msra.mxu0 %v4699_v15  ;;  %3808 = vmatprep.subr.mxu1 %v5539_v0 }
  0xa3   : > { %3732 = vmatprep.subr.mxu0 %v5539_v0 }
  0xa4   : > { %3733 = vmatpush3.msra.mxu0 %v4707_v16 }
  0xa5   : > { %3734 = vmatprep.subr.mxu0 %v5539_v0  ;;  %3809 = vmatpush3.xpose.msk.msra.mxu1 %vm729_vm1, %v4733_v21 }
  0xa6   : > { %3735 = vmatpush3.msra.mxu0 %v4716_v18  ;;  %3810 = vmatprep.subr.mxu1 %v5539_v0 }
  0xa7   : > { %3736 = vmatprep.subr.mxu0 %v5539_v0 }
  0xa8   : > { %3737 = vmatpush3.msra.mxu0 %v4724_v19 }
  0xa9   : > { %3738 = vmatprep.subr.mxu0 %v5539_v0  ;;  %3811 = vmatpush3.xpose.msk.msra.mxu1 %vm729_vm1, %v4741_v22 }
  0xaa   : > { %3739 = vmatpush3.msra.mxu0 %v4733_v21  ;;  %3812 = vmatprep.subr.mxu1 %v5539_v0 }
  0xab   : > { %3740 = vmatprep.subr.mxu0 %v5539_v0 }
  0xac   : > { %3741 = vmatpush3.msra.mxu0 %v4741_v22 }
  0xad   : > { %3742 = vmatprep.subr.mxu0 %v5539_v0  ;;  %3813 = vmatpush3.xpose.msk.msra.mxu1 %vm729_vm1, %v4750_v24 }
  0xae   : > { %3743 = vmatpush3.msra.mxu0 %v4750_v24  ;;  %1181 = vmatprep.subr.bf16.mxu1 %v3906_v50 }
  0xaf   : > { %3745 = vmatmul.mubr.f32.vlgmr.msra.gmra.mxu0 %v580_v34  ;;  %3747 = vmatprep.subr.mxu0 %v5539_v0 }
  0xb0   : > { %3748 = vmatpush3.xpose.msk.msra.mxu0 %vm729_vm1, %v4621_v1  ;;  %3779 = vmatprep.mubr.msk.f32.mxu0 %vm4367_vm0, %v5539_v0  ;;  %v3909_v1 = vld [vmem:[%s5519_s5 + $0x74] ss:$8 sps:$4 sm:$0xff]  }
  0xb1   : > { %3749 = vmatprep.subr.mxu0 %v5539_v0 }
  0xb4   : > { %3750 = vmatpush3.xpose.msk.msra.mxu0 %vm729_vm1, %v4626_v2  ;;  %v3916_v2 = vld [vmem:[%s5519_s5 + $0xd0] ss:$8 sps:$4 sm:$0xff]  }
  0xb5   : > { %3751 = vmatprep.subr.mxu0 %v5539_v0 }
  0xb8   : > { %3752 = vmatpush3.xpose.msk.msra.mxu0 %vm729_vm1, %v4635_v3  ;;  %v3907_v3 = vld [vmem:[%s5519_s5 + $0x70] ss:$8 sps:$4 sm:$0xff]  }
  0xb9   : > { %3753 = vmatprep.subr.mxu0 %v5539_v0 }
  0xbc   : > { %3754 = vmatpush3.xpose.msk.msra.mxu0 %vm729_vm1, %v4643_v4 }
  0xbd   : > { %3755 = vmatprep.subr.mxu0 %v5539_v0 }
  0xc0   : > { %3756 = vmatpush3.xpose.msk.msra.mxu0 %vm729_vm1, %v4649_v5  ;;  %v3924_v5 = vld [vmem:[%s5519_s5 + $0xc4] ss:$8 sps:$4 sm:$0xff]  }
  0xc1   : > { %3757 = vmatprep.subr.mxu0 %v5539_v0 }
  0xc4   : > { %3758 = vmatpush3.xpose.msk.msra.mxu0 %vm729_vm1, %v4663_v8  ;;  %v3915_v8 = vld [vmem:[%s5519_s5 + $0x64] ss:$8 sps:$4 sm:$0xff]  }
  0xc5   : > { %3759 = vmatprep.subr.mxu0 %v5539_v0 }
  0xc8   : > { %3760 = vmatpush3.xpose.msk.msra.mxu0 %vm729_vm1, %v4673_v10  ;;  %v3913_v10 = vld [vmem:[%s5519_s5 + $0x60] ss:$8 sps:$4 sm:$0xff]  }
  0xc9   : > { %3761 = vmatprep.subr.mxu0 %v5539_v0 }
  0xcc   : > { %3762 = vmatpush3.xpose.msk.msra.mxu0 %vm729_vm1, %v4682_v12  ;;  %v3921_v12 = vld [vmem:[%s5519_s5 + $0x54] ss:$8 sps:$4 sm:$0xff]  }
  0xcd   : > { %3763 = vmatprep.subr.mxu0 %v5539_v0 }
  0xd0   : > { %3764 = vmatpush3.xpose.msk.msra.mxu0 %vm729_vm1, %v4690_v13  ;;  %v3928_v13 = vld [vmem:[%s5519_s5 + $0xb0] ss:$8 sps:$4 sm:$0xff]  }
  0xd1   : > { %3765 = vmatprep.subr.mxu0 %v5539_v0 }
  0xd4   : > { %3766 = vmatpush3.xpose.msk.msra.mxu0 %vm729_vm1, %v4699_v15  ;;  %v3936_v15 = vld [vmem:[%s5519_s5 + $0xa4] ss:$8 sps:$4 sm:$0xff]  }
  0xd5   : > { %3767 = vmatprep.subr.mxu0 %v5539_v0 }
  0xd8   : > { %3768 = vmatpush3.xpose.msk.msra.mxu0 %vm729_vm1, %v4707_v16  ;;  %v3927_v16 = vld [vmem:[%s5519_s5 + $0x44] ss:$8 sps:$4 sm:$0xff]  }
  0xd9   : > { %3769 = vmatprep.subr.mxu0 %v5539_v0 }
  0xdc   : > { %3770 = vmatpush3.xpose.msk.msra.mxu0 %vm729_vm1, %v4716_v18  ;;  %v3925_v18 = vld [vmem:[%s5519_s5 + $0x40] ss:$8 sps:$4 sm:$0xff]  }
  0xdd   : > { %3771 = vmatprep.subr.mxu0 %v5539_v0 }
  0xe0   : > { %3772 = vmatpush3.xpose.msk.msra.mxu0 %vm729_vm1, %v4724_v19  ;;  %v3942_v19 = vld [vmem:[%s5519_s5 + $0x94] ss:$8 sps:$4 sm:$0xff]  }
  0xe1   : > { %3773 = vmatprep.subr.mxu0 %v5539_v0 }
  0xe4   : > { %3774 = vmatpush3.xpose.msk.msra.mxu0 %vm729_vm1, %v4733_v21  ;;  %v3940_v21 = vld [vmem:[%s5519_s5 + $0x90] ss:$8 sps:$4 sm:$0xff]  }
  0xe5   : > { %3775 = vmatprep.subr.mxu0 %v5539_v0 }
  0xe8   : > { %3776 = vmatpush3.xpose.msk.msra.mxu0 %vm729_vm1, %v4741_v22  ;;  %v3931_v22 = vld [vmem:[%s5519_s5 + $0x30] ss:$8 sps:$4 sm:$0xff]  }
  0xe9   : > { %3777 = vmatprep.subr.mxu0 %v5539_v0 }
  0xec   : > { %3778 = vmatpush3.xpose.msk.msra.mxu0 %vm729_vm1, %v4750_v24  ;;  %v3939_v24 = vld [vmem:[%s5519_s5 + $0x24] ss:$8 sps:$4 sm:$0xff]  }
  0xed   : > { %1015 = vmatprep.subr.mxu0 %v974_v52 }
 0x14f   : > { %v647_v35 = vpop.f32.mrf.mxu0 }
 0x150   : > { %v722_v36 = vmul.f32 0.001953125, %v647_v35  ;;  %v5541_v35 = vlaneseq }
 0x151   : > { %v3711_v37 = vpop.f32.mrf.mxu0 }
 0x152   : > { %3780 = vmatmul.mubr.msk.f32.vlgmr.msra.gmra.mxu0 %vm729_vm1, %v722_v36  ;;  %v724_v39 = vmul.f32 %v722_v36, %v722_v36  ;;  %v4982_v36 = vshrl.u32 %v5541_v35, 7  ;;  %v563_v37 = vld [vmem:[%s5517_s3] sm:$0x1] }
 0x153   : > { %1055 = vmatprep.mubr.f32.mxu0 %v5539_v0  ;;  %1016 = vmatpush1.msra.mxu0 %v973_v53 }
 0x154   : > { %1017 = vmatprep.subr.mxu0 %v972_v54 }
 0x155   : > { %1018 = vmatpush1.msra.mxu0 %v971_v56 }
 0x156   : > { %1019 = vmatprep.subr.mxu0 %v970_v58 }
 0x157   : > { %1020 = vmatpush1.msra.mxu0 %v969_v59 }
 0x158   : > { %1021 = vmatprep.subr.mxu0 %v968_v60 }
 0x159   : > { %1022 = vmatpush1.msra.mxu0 %v967_v63  ;;  %v3960_v63 = vld [vmem:[%s5519_s5 + $0x154] ss:$8 sps:$4 sm:$0xff]  }
 0x15a   : > { %1304 = vmatprep.subr.bf16.mxu0 %v3909_v1 }
 0x16f   : > { %v717_v38 = vpop.f32.mrf.mxu0 }
 0x170   : > { %v723_v40 = vmul.f32 0.001953125, %v717_v38  ;;  %v4988_v38 = vsub.s32 0, %v4982_v36 }
 0x171   : > { %v3746_v41 = vpop.f32.mrf.mxu0 }
 0x172   : > { %v725_v42 = vsub.f32 %v723_v40, %v724_v39  ;;  %v564_v41 = vld [vmem:[%s5518_s4] sm:$0x1] }
 0x174   : > { %v726_v43 = vmax.f32 %v725_v42, 0.0 }
 0x176   : > { %v727_v44 = vadd.f32 1e-05, %v726_v43 }
 0x178   : > { %4144 = vrsqrt.f32 %v727_v44 }
 0x179   : > { %4146 = vpow2.f32 %v3200_v47 }
 0x185   : > { %v4145_v45 = vpop.eup %4144 }
 0x186   : > { %3815 = vmatmul.mubr.msk.f32.vlgmr.msra.gmra.mxu1 %vm729_vm1, %v4145_v45  ;;  %v4147_v48 = vpop.eup %4146 }
 0x187   : > { %v963_v49 = vadd.f32 1.0, %v4147_v48  ;;  %1182 = vmatpush1.bf16.msra.mxu1 %v3904_v51  ;;  %1213 = vmatprep.mubr.bf16.mxu1 %v5542_v31 }
 0x188   : > { %1183 = vmatprep.subr.bf16.mxu1 %v3912_v55 }
 0x189   : > { %4148 = vrcp.f32 %v963_v49 }
 0x18b   : > { %1184 = vmatpush1.bf16.msra.mxu1 %v3910_v57 }
 0x18c   : > { %1185 = vmatprep.subr.bf16.mxu1 %v3918_v61  ;;  %v3957_v61 = vld [vmem:[%s5519_s5 + $0x164] ss:$8 sps:$4 sm:$0xff]  }
 0x18f   : > { %1186 = vmatpush1.bf16.msra.mxu1 %v3916_v2 }
 0x190   : > { %1187 = vmatprep.subr.bf16.mxu1 %v3924_v5  ;;  %v3963_v5 = vld [vmem:[%s5519_s5 + $0x144] ss:$8 sps:$4 sm:$0xff]  }
 0x193   : > { %1188 = vmatpush1.bf16.msra.mxu1 %v3922_v9  ;;  %v3966_v9 = vld [vmem:[%s5519_s5 + $0x134] ss:$8 sps:$4 sm:$0xff]  }
 0x194   : > { %1189 = vmatprep.subr.bf16.mxu1 %v3930_v11  ;;  %v3969_v11 = vld [vmem:[%s5519_s5 + $0x124] ss:$8 sps:$4 sm:$0xff]  }
 0x196   : > { %v4149_v62 = vpop.eup %4148 }
 0x197   : > { %v966_v4 = vmul.f32 %v4149_v62, %v959_v46  ;;  %1190 = vmatpush1.bf16.msra.mxu1 %v3928_v13  ;;  %v3955_v62 = vld [vmem:[%s5519_s5 + $0x160] ss:$8 sps:$4 sm:$0xff]   ;;  %v3972_v13 = vld [vmem:[%s5519_s5 + $0x114] ss:$8 sps:$4 sm:$0xff]  }
 0x198   : > { %1191 = vmatprep.subr.bf16.mxu1 %v3936_v15  ;;  %v3975_v15 = vld [vmem:[%s5519_s5 + $0x104] ss:$8 sps:$4 sm:$0xff]  }
 0x199   : > { %3201 = vmatmul.mubr.msk.f32.vlgmr.msra.gmra.mxu0 %vm987_vm2, %v966_v4 }
 0x19a   : > { %1305 = vmatpush1.bf16.msra.mxu0 %v3907_v3  ;;  %1336 = vmatprep.mubr.bf16.mxu0 %v5542_v31  ;;  %v3958_v3 = vld [vmem:[%s5519_s5 + $0x150] ss:$8 sps:$4 sm:$0xff]  }
 0x19b   : > { %1306 = vmatprep.subr.bf16.mxu0 %v3915_v8  ;;  %1192 = vmatpush1.bf16.msra.mxu1 %v3934_v17  ;;  %v3961_v8 = vld [vmem:[%s5519_s5 + $0x140] ss:$8 sps:$4 sm:$0xff]  }
 0x19c   : > { %1193 = vmatprep.subr.bf16.mxu1 %v3942_v19 }
 0x19e   : > { %1307 = vmatpush1.bf16.msra.mxu0 %v3913_v10  ;;  %v3964_v10 = vld [vmem:[%s5519_s5 + $0x130] ss:$8 sps:$4 sm:$0xff]  }
 0x19f   : > { %1308 = vmatprep.subr.bf16.mxu0 %v3921_v12  ;;  %1194 = vmatpush1.bf16.msra.mxu1 %v3940_v21  ;;  %v3967_v12 = vld [vmem:[%s5519_s5 + $0x120] ss:$8 sps:$4 sm:$0xff]   ;;  %v5051_v21 = vld [vmem:[%s5522_s8 + $0x78] sm:$0xff] }
 0x1a0   : > { %1195 = vmatprep.subr.bf16.mxu1 %v3948_v23  ;;  %v5063_v23 = vld [vmem:[%s5522_s8 + $0x70] sm:$0xff] }
 0x1a2   : > { %1309 = vmatpush1.bf16.msra.mxu0 %v3919_v14  ;;  %v3970_v14 = vld [vmem:[%s5519_s5 + $0x110] ss:$8 sps:$4 sm:$0xff]  }
 0x1a3   : > { %1310 = vmatprep.subr.bf16.mxu0 %v3927_v16  ;;  %1196 = vmatpush1.bf16.msra.mxu1 %v3946_v25  ;;  %v3973_v16 = vld [vmem:[%s5519_s5 + $0x100] ss:$8 sps:$4 sm:$0xff]  }
 0x1a4   : > { %1447 = vmatprep.subr.bf16.mxu1 %v3954_v27  ;;  %v5077_v25 = vld [vmem:[%s5522_s8 + $0x68] sm:$0xff]  ;;  %v5094_v27 = vld [vmem:[%s5522_s8 + $0x60] sm:$0xff] }
 0x1a6   : > { %1311 = vmatpush1.bf16.msra.mxu0 %v3925_v18 }
 0x1a7   : > { %1312 = vmatprep.subr.bf16.mxu0 %v3933_v20  ;;  %v5046_v20 = vld [vmem:[%s5522_s8 + $0xf8] sm:$0xff] }
 0x1aa   : > { %1313 = vmatpush1.bf16.msra.mxu0 %v3931_v22  ;;  %v5056_v22 = vld [vmem:[%s5522_s8 + $0xf0] sm:$0xff] }
 0x1ab   : > { %1314 = vmatprep.subr.bf16.mxu0 %v3939_v24  ;;  %v5070_v24 = vld [vmem:[%s5522_s8 + $0xe8] sm:$0xff] }
 0x1ae   : > { %1315 = vmatpush1.bf16.msra.mxu0 %v3937_v26  ;;  %v5088_v26 = vld [vmem:[%s5522_s8 + $0xe0] sm:$0xff] }
 0x1af   : > { %1316 = vmatprep.subr.bf16.mxu0 %v3945_v29  ;;  %v5108_v29 = vld [vmem:[%s5522_s8 + $0x58] sm:$0xff] }
 0x1b2   : > { %1317 = vmatpush1.bf16.msra.mxu0 %v3943_v28  ;;  %v5101_v28 = vld [vmem:[%s5522_s8 + $0xd8] sm:$0xff] }
 0x1b3   : > { %1318 = vmatprep.subr.bf16.mxu0 %v3951_v30  ;;  %v5115_v30 = vld [vmem:[%s5522_s8 + $0xd0] sm:$0xff] }
 0x1b6   : > { %1319 = vmatpush1.bf16.msra.mxu0 %v3949_v32  ;;  %v5122_v32 = vld [vmem:[%s5522_s8 + $0x50] sm:$0xff] }
 0x1b7   : > { %3539 = vmatprep.subr.mxu0 %v5046_v20 }
 0x212   : > { %v847_v33 = vpop.f32.mrf.mxu0 }
 0x214   : > { %v3781_v34 = vpop.f32.mrf.mxu0 }
 0x215   : > { %v5136_v34 = vld [vmem:[%s5522_s8 + $0x48] sm:$0xff] }
 0x246   : > { %v920_v39 = vpop.f32.mrf.mxu1 }
 0x247   : > { %v924_v40 = vmul.f32 %v920_v39, %v563_v37  ;;  %v5143_v37 = vld [vmem:[%s5522_s8 + $0xc0] sm:$0xff] }
 0x248   : > { %v3816_v42 = vpop.f32.mrf.mxu1  ;;  %v5150_v39 = vld [vmem:[%s5522_s8 + $0x40] sm:$0xff] }
 0x249   : > { %v925_v43 = vmul.f32 %v924_v40, %v847_v33  ;;  %v930_v44 = vrot.slane %v924_v40, %v4988_v38  ;;  %v5129_v33 = vld [vmem:[%s5522_s8 + $0xc8] sm:$0xff]  ;;  %v5157_v40 = vld [vmem:[%s5522_s8 + $0xb8] sm:$0xff]  ;;  %v5171_v42 = vld [vmem:[%s5522_s8 + $0xb0] sm:$0xff] }
 0x24b   : > { %v926_v45 = vsub.f32 %v564_v41, %v925_v43  ;;  %v931_v46 = vmul.f32 %v930_v44, %v4652_v6  ;;  %v932_v47 = vmul.f32 %v930_v44, %v4655_v7  ;;  %v3952_v7 = vld [vmem:[%s5519_s5 + $0x170] ss:$8 sps:$4 sm:$0xff]   ;;  %v5185_v44 = vld [vmem:[%s5522_s8 + $0xa8] sm:$0xff] }
 0x24c   : > { %v5164_v41 = vld [vmem:[%s5522_s8 + $0x38] sm:$0xff]  ;;  %v5178_v43 = vld [vmem:[%s5522_s8 + $0x30] sm:$0xff] }
 0x24d   : > { %v937_v48 = vrot.slane %v926_v45, %v4988_v38  ;;  %v5192_v45 = vld [vmem:[%s5522_s8 + $0x28] sm:$0xff] }
 0x24f   : > { %v939_v49 = vadd.f32 %v937_v48, %v931_v46  ;;  %v940_v50 = vadd.f32 %v937_v48, %v932_v47  ;;  %v5199_v46 = vld [vmem:[%s5522_s8 + $0xa0] sm:$0xff]  ;;  %v5210_v48 = vld [vmem:[%s5522_s8 + $0x98] sm:$0xff] }
 0x250   : > { %v5204_v47 = vld [vmem:[%s5522_s8 + $0x20] sm:$0xff] }
 0x251   : > { %v3198_v51 = vmul.f32 -1.442695, %v939_v49  ;;  %v3199_v52 = vmul.f32 -1.442695, %v940_v50 }
 0x253   : > { %4150 = vpow2.f32 %v3198_v51  ;;  %v5231_v51 = vld [vmem:[%s5522_s8 + $0x10] sm:$0xff] }
 0x254   : > { %4152 = vpow2.f32 %v3199_v52  ;;  %v5238_v52 = vld [vmem:[%s5522_s8 + $0x88] sm:$0xff] }
 0x260   : > { %v4151_v53 = vpop.eup %4150 }
 0x261   : > { %v4153_v54 = vpop.eup %4152  ;;  %v947_v55 = vadd.f32 1.0, %v4151_v53  ;;  %v5245_v53 = vld [vmem:[%s5522_s8 + $0x8] sm:$0xff] }
 0x262   : > { %v948_v56 = vadd.f32 1.0, %v4153_v54  ;;  %v5252_v54 = vld [vmem:[%s5522_s8 + $0x80] sm:$0xff] }
 0x263   : > { %4154 = vrcp.f32 %v947_v55  ;;  %v5259_v55 = vld [vmem:[%s5522_s8] sm:$0xff] }
 0x264   : > { %4156 = vrcp.f32 %v948_v56  ;;  %v1057_v56 = vpop.f32.mrf.mxu0 }
 0x270   : > { %v4155_v57 = vpop.eup %4154 }
 0x271   : > { %v4157_v58 = vpop.eup %4156  ;;  %v953_v59 = vmul.f32 %v4155_v57, %v939_v49  ;;  %v5217_v49 = vld [vmem:[%s5522_s8 + $0x18] sm:$0xff] }
 0x272   : > { %v954_v6 = vmul.f32 %v4157_v58, %v940_v50  ;;  %v5224_v50 = vld [vmem:[%s5522_s8 + $0x90] sm:$0xff]  ;;  %v1059_v58 = vpop.f32.mrf.mxu0 }
 0x273   : > { %957 = vst [vmem:[#allocation2 + $0x1] sm:$0xff] %v953_v59 }
 0x274   : > { %958 = vst [vmem:[#allocation2 + $0x9] sm:$0xff] %v954_v6  ;;  %v1083_v60 = vpack.c.bf16 %v954_v6, %v953_v59 }
 0x276   : > { %1214 = vmatmul.mubr.bf16.vlgmr.msra.gmra.mxu1 %v1083_v60  ;;  %v5275_v60 = vsub.s32 1, %v4982_v36 }
 0x277   : > { %1448 = vmatpush1.bf16.msra.mxu1 %v3952_v7  ;;  %1479 = vmatprep.mubr.bf16.mxu1 %v5542_v31  ;;  %v975_v7 = vld [vmem:[%s5521_s7] sm:$0x3] }
 0x278   : > { %1449 = vmatprep.subr.bf16.mxu1 %v3957_v61 }
 0x27a   : > { %v1062_v1 = vld [vmem:[#allocation2] sm:$0xff] }
 0x27b   : > { %v1063_v2 = vld [vmem:[#allocation2 + $0x8] sm:$0xff]  ;;  %1450 = vmatpush1.bf16.msra.mxu1 %v3955_v62 }
 0x27c   : > { %v1064_v4 = vpack.c.bf16 %v1063_v2, %v1062_v1  ;;  %1451 = vmatprep.subr.bf16.mxu1 %v3960_v63  ;;  %v1347_v17 = vld [vmem:[#allocation2 + $0x2] sm:$0xff]  ;;  %v1348_v18 = vld [vmem:[#allocation2 + $0xa] sm:$0xff]  ;;  %v980_v63 = vrot.slane %v975_v7, %v4988_v38  ;;  %v984_v1 = vrot.slane %v975_v7, %v5275_v60 }
 0x27d   : > { %v1349_v19 = vpack.c.bf16 %v1348_v18, %v1347_v17 }
 0x27e   : > { %1337 = vmatmul.mubr.bf16.vlgmr.msra.gmra.mxu0 %v1064_v4  ;;  %v1058_v4 = vadd.f32 %v1057_v56, %v980_v63 }
 0x27f   : > { %1452 = vmatpush1.bf16.msra.mxu1 %v3958_v3  ;;  %3540 = vmatpush3.msra.mxu0 %v5051_v21 }
 0x280   : > { %1453 = vmatprep.subr.bf16.mxu1 %v3963_v5  ;;  %3541 = vmatprep.subr.mxu0 %v5056_v22 }
 0x281   : > { %3542 = vmatpush3.msra.mxu0 %v5063_v23 }
 0x282   : > { %3543 = vmatprep.subr.mxu0 %v5070_v24 }
 0x283   : > { %1454 = vmatpush1.bf16.msra.mxu1 %v3961_v8  ;;  %3544 = vmatpush3.msra.mxu0 %v5077_v25  ;;  %v1060_v8 = vadd.f32 %v1059_v58, %v984_v1 }
 0x284   : > { %1455 = vmatprep.subr.bf16.mxu1 %v3966_v9  ;;  %3545 = vmatprep.subr.mxu0 %v5088_v26 }
 0x285   : > { %3546 = vmatpush3.msra.mxu0 %v5094_v27  ;;  %v1501_v17 = vrot.slane %v1060_v8, %v4988_v38 }
 0x286   : > { %3547 = vmatprep.subr.mxu0 %v5101_v28 }
 0x287   : > { %1456 = vmatpush1.bf16.msra.mxu1 %v3964_v10  ;;  %3548 = vmatpush3.msra.mxu0 %v5108_v29 }
 0x288   : > { %1457 = vmatprep.subr.bf16.mxu1 %v3969_v11  ;;  %3549 = vmatprep.subr.mxu0 %v5115_v30 }
 0x289   : > { %3550 = vmatpush3.msra.mxu0 %v5122_v32 }
 0x28a   : > { %3551 = vmatprep.subr.mxu0 %v5129_v33 }
 0x28b   : > { %1458 = vmatpush1.bf16.msra.mxu1 %v3967_v12  ;;  %3552 = vmatpush3.msra.mxu0 %v5136_v34 }
 0x28c   : > { %1459 = vmatprep.subr.bf16.mxu1 %v3972_v13  ;;  %3553 = vmatprep.subr.mxu0 %v5143_v37 }
 0x28d   : > { %3554 = vmatpush3.msra.mxu0 %v5150_v39 }
 0x28e   : > { %3555 = vmatprep.subr.mxu0 %v5157_v40 }
 0x28f   : > { %1460 = vmatpush1.bf16.msra.mxu1 %v3970_v14  ;;  %3556 = vmatpush3.msra.mxu0 %v5164_v41  ;;  %v1497_v14 = vrot.slane %v1058_v4, %v4988_v38 }
 0x290   : > { %1461 = vmatprep.subr.bf16.mxu1 %v3975_v15  ;;  %3557 = vmatprep.subr.mxu0 %v5171_v42 }
 0x291   : > { %3558 = vmatpush3.msra.mxu0 %v5178_v43 }
 0x292   : > { %3559 = vmatprep.subr.mxu0 %v5185_v44 }
 0x293   : > { %1462 = vmatpush1.bf16.msra.mxu1 %v3973_v16  ;;  %3560 = vmatpush3.msra.mxu0 %v5192_v45 }
 0x294   : > { %3574 = vmatprep.subr.mxu1 %v5046_v20  ;;  %3561 = vmatprep.subr.mxu0 %v5199_v46 }
 0x295   : > { %3562 = vmatpush3.msra.mxu0 %v5204_v47 }
 0x296   : > { %1480 = vmatmul.mubr.bf16.vlgmr.msra.gmra.mxu1 %v1349_v19  ;;  %3563 = vmatprep.subr.mxu0 %v5210_v48 }
 0x297   : > { %3575 = vmatpush3.msra.mxu1 %v5051_v21  ;;  %3564 = vmatpush3.msra.mxu0 %v5217_v49 }
 0x298   : > { %3576 = vmatprep.subr.mxu1 %v5056_v22  ;;  %3565 = vmatprep.subr.mxu0 %v5224_v50 }
 0x299   : > { %3577 = vmatpush3.msra.mxu1 %v5063_v23  ;;  %3566 = vmatpush3.msra.mxu0 %v5231_v51 }
 0x29a   : > { %3578 = vmatprep.subr.mxu1 %v5070_v24  ;;  %3567 = vmatprep.subr.mxu0 %v5238_v52 }
 0x29b   : > { %3579 = vmatpush3.msra.mxu1 %v5077_v25  ;;  %3568 = vmatpush3.msra.mxu0 %v5245_v53 }
 0x29c   : > { %3580 = vmatprep.subr.mxu1 %v5088_v26  ;;  %3569 = vmatprep.subr.mxu0 %v5252_v54 }
 0x29d   : > { %3581 = vmatpush3.msra.mxu1 %v5094_v27  ;;  %3570 = vmatpush3.msra.mxu0 %v5259_v55 }
 0x29e   : > { %3582 = vmatprep.subr.mxu1 %v5101_v28  ;;  %3609 = vmatprep.subr.msk.mxu0 %vm729_vm1, %v5046_v20 }
 0x29f   : > { %3583 = vmatpush3.msra.mxu1 %v5108_v29 }
 0x2a0   : > { %3584 = vmatprep.subr.mxu1 %v5115_v30 }
 0x2a1   : > { %3585 = vmatpush3.msra.mxu1 %v5122_v32 }
 0x2a2   : > { %3586 = vmatprep.subr.mxu1 %v5129_v33 }
 0x2a3   : > { %3587 = vmatpush3.msra.mxu1 %v5136_v34 }
 0x2a4   : > { %3588 = vmatprep.subr.mxu1 %v5143_v37 }
 0x2a5   : > { %3589 = vmatpush3.msra.mxu1 %v5150_v39 }
 0x2a6   : > { %3590 = vmatprep.subr.mxu1 %v5157_v40 }
 0x2a7   : > { %3591 = vmatpush3.msra.mxu1 %v5164_v41 }
 0x2a8   : > { %3592 = vmatprep.subr.mxu1 %v5171_v42 }
 0x2a9   : > { %3593 = vmatpush3.msra.mxu1 %v5178_v43 }
 0x2aa   : > { %3594 = vmatprep.subr.mxu1 %v5185_v44 }
 0x2ab   : > { %3595 = vmatpush3.msra.mxu1 %v5192_v45 }
 0x2ac   : > { %3596 = vmatprep.subr.mxu1 %v5199_v46 }
 0x2ad   : > { %3597 = vmatpush3.msra.mxu1 %v5204_v47 }
 0x2ae   : > { %3598 = vmatprep.subr.mxu1 %v5210_v48 }
 0x2af   : > { %3599 = vmatpush3.msra.mxu1 %v5217_v49 }
 0x2b0   : > { %3600 = vmatprep.subr.mxu1 %v5224_v50 }
 0x2b1   : > { %3601 = vmatpush3.msra.mxu1 %v5231_v51 }
 0x2b2   : > { %3602 = vmatprep.subr.mxu1 %v5238_v52 }
 0x2b3   : > { %3603 = vmatpush3.msra.mxu1 %v5245_v53 }
 0x2b4   : > { %3604 = vmatprep.subr.mxu1 %v5252_v54 }
 0x2b5   : > { %3605 = vmatpush3.msra.mxu1 %v5259_v55 }
 0x2b6   : > { %3643 = vmatprep.subr.msk.mxu1 %vm729_vm1, %v5046_v20 }
 0x336   : > { %v1215_v57 = vpop.f32.mrf.mxu1 }
 0x338   : > { %v1217_v6 = vpop.f32.mrf.mxu1 }
 0x33a   : > { %v1219_v62 = vpop.f32.mrf.mxu1 }
 0x33c   : > { %v1221_v3 = vpop.f32.mrf.mxu1 }
 0x33e   : > { %v1338_v59 = vpop.f32.mrf.mxu0 }
 0x33f   : > { %v1339_v5 = vadd.f32 %v1338_v59, %v1215_v57 }
 0x340   : > { %v1340_v61 = vpop.f32.mrf.mxu0 }
 0x341   : > { %v1341_v10 = vadd.f32 %v1340_v61, %v1217_v6 }
 0x342   : > { %v1342_v2 = vpop.f32.mrf.mxu0 }
 0x343   : > { %v1343_v15 = vadd.f32 %v1342_v2, %v1219_v62 }
 0x344   : > { %v1344_v12 = vpop.f32.mrf.mxu0 }
 0x345   : > { %v1345_v19 = vadd.f32 %v1344_v12, %v1221_v3 }
 0x356   : > { %v1481_v9 = vpop.f32.mrf.mxu1 }
 0x357   : > { %v1490_v11 = vadd.f32 %v1481_v9, %v1339_v5 }
 0x358   : > { %v1483_v13 = vpop.f32.mrf.mxu1 }
 0x359   : > { %v1491_v16 = vadd.f32 %v1483_v13, %v1341_v10  ;;  %v5281_v20 = vadd.f32 %v1497_v14, %v1490_v11 }
 0x35a   : > { %v1485_v18 = vpop.f32.mrf.mxu1 }
 0x35b   : > { %v1492_v7 = vadd.f32 %v1485_v18, %v1343_v15  ;;  %v5283_v0 = vadd.f32 %v1501_v17, %v1491_v16  ;;  %v1554_v59 = vmul.f32 %v5281_v20, %v5281_v20 }
 0x35c   : > { %v1487_v56 = vpop.f32.mrf.mxu1 }
 0x35d   : > { %v5285_v57 = vadd.f32 %v1497_v14, %v1492_v7  ;;  %v1493_v58 = vadd.f32 %v1487_v56, %v1345_v19  ;;  %v1555_v63 = vmul.f32 %v5283_v0, %v5283_v0 }
 0x35f   : > { %v1540_v6 = vadd.f32 %v5285_v57, %v5281_v20  ;;  %v1556_v61 = vmul.f32 %v5285_v57, %v5285_v57  ;;  %v5293_v62 = vadd.f32 %v1501_v17, %v1493_v58 }
 0x361   : > { %v1541_v1 = vrot.slane %v1540_v6, 4  ;;  %v1558_v2 = vadd.f32 %v1556_v61, %v1554_v59  ;;  %v1547_v3 = vadd.f32 %v5293_v62, %v5283_v0  ;;  %v1557_v4 = vmul.f32 %v5293_v62, %v5293_v62 }
 0x363   : > { %v1542_v5 = vadd.f32 %v1541_v1, %v1540_v6  ;;  %v1559_v8 = vrot.slane %v1558_v2, 4  ;;  %v1548_v9 = vrot.slane %v1547_v3, 4  ;;  %v1565_v10 = vadd.f32 %v1557_v4, %v1555_v63  ;;  %v4008_v4 = vld [vmem:[#allocation9 + $0x54] ss:$8 sps:$4 sm:$0xff]  }
 0x365   : > { %v1543_v11 = vrot.slane %v1542_v5, 2  ;;  %v1560_v12 = vadd.f32 %v1559_v8, %v1558_v2  ;;  %v1549_v13 = vadd.f32 %v1548_v9, %v1547_v3  ;;  %v1566_v14 = vrot.slane %v1565_v10, 4  ;;  %v4003_v3 = vld [vmem:[#allocation9 + $0x60] ss:$8 sps:$4 sm:$0xff]   ;;  %v4006_v8 = vld [vmem:[#allocation9 + $0x50] ss:$8 sps:$4 sm:$0xff]  }
 0x366   : > { %v4009_v9 = vld [vmem:[#allocation9 + $0x170] ss:$8 sps:$4 sm:$0xff]  }
 0x367   : > { %v1550_v15 = vrot.slane %v1549_v13, 2  ;;  %v1544_v16 = vadd.f32 %v1543_v11, %v1542_v5  ;;  %v1567_v17 = vadd.f32 %v1566_v14, %v1565_v10  ;;  %v1561_v18 = vrot.slane %v1560_v12, 2  ;;  %v4011_v5 = vld [vmem:[#allocation9 + $0x174] ss:$8 sps:$4 sm:$0xff]   ;;  %v4017_v14 = vld [vmem:[#allocation9 + $0x164] ss:$8 sps:$4 sm:$0xff]  }
 0x368   : > { %v4176_v10 = vld [vmem:[%s4596_s23] sm:$0xff]  ;;  %v4177_v11 = vld [vmem:[%s4596_s23 + $0x8] sm:$0xff]  ;;  %s3025_s23 = scalar_lea.sflag [#allocation6], %s4592_s18 }
 0x369   : > { %v1551_v19 = vadd.f32 %v1550_v15, %v1549_v13  ;;  %v1568_v7 = vrot.slane %v1567_v17, 2  ;;  %v1562_v56 = vadd.f32 %v1561_v18, %v1560_v12  ;;  %v1545_v58 = vrot.slane %v1544_v16, 1  ;;  %v4014_v13 = vld [vmem:[#allocation9 + $0x44] ss:$8 sps:$4 sm:$0xff]   ;;  %v4012_v15 = vld [vmem:[#allocation9 + $0x40] ss:$8 sps:$4 sm:$0xff]  }
 0x36a   : > { %v2085_v12 = vpack.c.bf16 %v4177_v11, %v4176_v10  ;;  %v4023_v18 = vld [vmem:[#allocation9 + $0x154] ss:$8 sps:$4 sm:$0xff]   ;;  %v4090_v10 = vld [vmem:[#allocation9 + $0x190] ss:$8 sps:$4 sm:$0xff]  }
 0x36b   : > { %v1552_v59 = vrot.slane %v1551_v19, 1  ;;  %v1569_v61 = vadd.f32 %v1568_v7, %v1567_v17  ;;  %v1563_v35 = vrot.slane %v1562_v56, 1  ;;  %v1546_v1 = vadd.f32 %v1545_v58, %v1544_v16  ;;  %v4015_v16 = vld [vmem:[#allocation9 + $0x160] ss:$8 sps:$4 sm:$0xff]   ;;  %v4020_v17 = vld [vmem:[#allocation9 + $0x34] ss:$8 sps:$4 sm:$0xff]  }
 0x36c   : > { %v4021_v7 = vld [vmem:[#allocation9 + $0x150] ss:$8 sps:$4 sm:$0xff]   ;;  %v4029_v58 = vld [vmem:[#allocation9 + $0x144] ss:$8 sps:$4 sm:$0xff]   ;;  %v4092_v11 = vld [vmem:[#allocation9 + $0x194] ss:$8 sps:$4 sm:$0xff]  }
 0x36d   : > { %v1553_v31 = vadd.f32 %v1552_v59, %v1551_v19  ;;  %v1570_v6 = vrot.slane %v1569_v61, 1  ;;  %v1564_v2 = vadd.f32 %v1563_v35, %v1562_v56  ;;  %v4018_v19 = vld [vmem:[#allocation9 + $0x30] ss:$8 sps:$4 sm:$0xff]   ;;  %v4026_v56 = vld [vmem:[#allocation9 + $0x24] ss:$8 sps:$4 sm:$0xff]  }
 0x36e   : > { %v4024_v59 = vld [vmem:[#allocation9 + $0x20] ss:$8 sps:$4 sm:$0xff]  }
 0x36f   : > { %1636 = vmatprep.mubr.f32.mxu0 %v1553_v31  ;;  %v1571_v63 = vadd.f32 %v1570_v6, %v1569_v61  ;;  %v4027_v61 = vld [vmem:[#allocation9 + $0x140] ss:$8 sps:$4 sm:$0xff]   ;;  %v4032_v6 = vld [vmem:[#allocation9 + $0x14] ss:$8 sps:$4 sm:$0xff]  }
 0x370   : > { %1637 = vmatmul.mubr.f32.vlgmr.msra.gmra.mxu0 %v1546_v1  ;;  %v4035_v1 = vld [vmem:[#allocation9 + $0x134] ss:$8 sps:$4 sm:$0xff]  }
 0x371   : > { %1706 = vmatprep.mubr.f32.mxu1 %v1571_v63  ;;  %3610 = vmatpush3.xpose.msk.msra.mxu0 %vm729_vm1, %v5051_v21  ;;  %v4030_v63 = vld [vmem:[#allocation9 + $0x10] ss:$8 sps:$4 sm:$0xff]  }
 0x372   : > { %1707 = vmatmul.mubr.f32.vlgmr.msra.gmra.mxu1 %v1564_v2  ;;  %3611 = vmatprep.subr.msk.mxu0 %vm729_vm1, %v5056_v22  ;;  %v4033_v2 = vld [vmem:[#allocation9 + $0x130] ss:$8 sps:$4 sm:$0xff]  }
 0x373   : > { %3644 = vmatpush3.xpose.msk.msra.mxu1 %vm729_vm1, %v5051_v21 }
 0x374   : > { %3645 = vmatprep.subr.msk.mxu1 %vm729_vm1, %v5056_v22 }
 0x375   : > { %3612 = vmatpush3.xpose.msk.msra.mxu0 %vm729_vm1, %v5063_v23 }
 0x376   : > { %3613 = vmatprep.subr.msk.mxu0 %vm729_vm1, %v5070_v24 }
 0x377   : > { %3646 = vmatpush3.xpose.msk.msra.mxu1 %vm729_vm1, %v5063_v23 }
 0x378   : > { %3647 = vmatprep.subr.msk.mxu1 %vm729_vm1, %v5070_v24 }
 0x379   : > { %3614 = vmatpush3.xpose.msk.msra.mxu0 %vm729_vm1, %v5077_v25 }
 0x37a   : > { %3615 = vmatprep.subr.msk.mxu0 %vm729_vm1, %v5088_v26 }
 0x37b   : > { %3648 = vmatpush3.xpose.msk.msra.mxu1 %vm729_vm1, %v5077_v25 }
 0x37c   : > { %3649 = vmatprep.subr.msk.mxu1 %vm729_vm1, %v5088_v26 }
 0x37d   : > { %3616 = vmatpush3.xpose.msk.msra.mxu0 %vm729_vm1, %v5094_v27 }
 0x37e   : > { %3617 = vmatprep.subr.msk.mxu0 %vm729_vm1, %v5101_v28 }
 0x37f   : > { %3650 = vmatpush3.xpose.msk.msra.mxu1 %vm729_vm1, %v5094_v27 }
 0x380   : > { %3651 = vmatprep.subr.msk.mxu1 %vm729_vm1, %v5101_v28 }
 0x381   : > { %3618 = vmatpush3.xpose.msk.msra.mxu0 %vm729_vm1, %v5108_v29 }
 0x382   : > { %3619 = vmatprep.subr.msk.mxu0 %vm729_vm1, %v5115_v30 }
 0x383   : > { %3652 = vmatpush3.xpose.msk.msra.mxu1 %vm729_vm1, %v5108_v29  ;;  %v5569_v29 = vmov 0  }
 0x384   : > { %3653 = vmatprep.subr.msk.mxu1 %vm729_vm1, %v5115_v30 }
 0x385   : > { %3620 = vmatpush3.xpose.msk.msra.mxu0 %vm729_vm1, %v5122_v32 }
 0x386   : > { %3621 = vmatprep.subr.msk.mxu0 %vm729_vm1, %v5129_v33 }
 0x387   : > { %3654 = vmatpush3.xpose.msk.msra.mxu1 %vm729_vm1, %v5122_v32 }
 0x388   : > { %3655 = vmatprep.subr.msk.mxu1 %vm729_vm1, %v5129_v33 }
 0x389   : > { %3622 = vmatpush3.xpose.msk.msra.mxu0 %vm729_vm1, %v5136_v34 }
 0x38a   : > { %3623 = vmatprep.subr.msk.mxu0 %vm729_vm1, %v5143_v37 }
 0x38b   : > { %3656 = vmatpush3.xpose.msk.msra.mxu1 %vm729_vm1, %v5136_v34  ;;  %v3978_v34 = vld [vmem:[#allocation10 + $0x74] ss:$8 sps:$4 sm:$0xff]  }
 0x38c   : > { %3657 = vmatprep.subr.msk.mxu1 %vm729_vm1, %v5143_v37  ;;  %v3976_v37 = vld [vmem:[#allocation10 + $0x70] ss:$8 sps:$4 sm:$0xff]  }
 0x38d   : > { %3624 = vmatpush3.xpose.msk.msra.mxu0 %vm729_vm1, %v5150_v39 }
 0x38e   : > { %3625 = vmatprep.subr.msk.mxu0 %vm729_vm1, %v5157_v40 }
 0x38f   : > { %3658 = vmatpush3.xpose.msk.msra.mxu1 %vm729_vm1, %v5150_v39  ;;  %v3981_v39 = vld [vmem:[#allocation10 + $0x64] ss:$8 sps:$4 sm:$0xff]  }
 0x390   : > { %3659 = vmatprep.subr.msk.mxu1 %vm729_vm1, %v5157_v40  ;;  %v3979_v40 = vld [vmem:[#allocation10 + $0x60] ss:$8 sps:$4 sm:$0xff]  }
 0x391   : > { %3626 = vmatpush3.xpose.msk.msra.mxu0 %vm729_vm1, %v5164_v41 }
 0x392   : > { %3627 = vmatprep.subr.msk.mxu0 %vm729_vm1, %v5171_v42 }
 0x393   : > { %3660 = vmatpush3.xpose.msk.msra.mxu1 %vm729_vm1, %v5164_v41  ;;  %v3984_v41 = vld [vmem:[#allocation10 + $0x54] ss:$8 sps:$4 sm:$0xff]  }
 0x394   : > { %3661 = vmatprep.subr.msk.mxu1 %vm729_vm1, %v5171_v42  ;;  %v3982_v42 = vld [vmem:[#allocation10 + $0x50] ss:$8 sps:$4 sm:$0xff]  }
 0x395   : > { %3628 = vmatpush3.xpose.msk.msra.mxu0 %vm729_vm1, %v5178_v43 }
 0x396   : > { %3629 = vmatprep.subr.msk.mxu0 %vm729_vm1, %v5185_v44 }
 0x397   : > { %3662 = vmatpush3.xpose.msk.msra.mxu1 %vm729_vm1, %v5178_v43  ;;  %v3987_v43 = vld [vmem:[#allocation10 + $0x44] ss:$8 sps:$4 sm:$0xff]  }
 0x398   : > { %3663 = vmatprep.subr.msk.mxu1 %vm729_vm1, %v5185_v44  ;;  %v3985_v44 = vld [vmem:[#allocation10 + $0x40] ss:$8 sps:$4 sm:$0xff]  }
 0x399   : > { %3630 = vmatpush3.xpose.msk.msra.mxu0 %vm729_vm1, %v5192_v45 }
 0x39a   : > { %3631 = vmatprep.subr.msk.mxu0 %vm729_vm1, %v5199_v46 }
 0x39b   : > { %3664 = vmatpush3.xpose.msk.msra.mxu1 %vm729_vm1, %v5192_v45  ;;  %v3990_v45 = vld [vmem:[#allocation10 + $0x34] ss:$8 sps:$4 sm:$0xff]  }
 0x39c   : > { %3665 = vmatprep.subr.msk.mxu1 %vm729_vm1, %v5199_v46  ;;  %v3988_v46 = vld [vmem:[#allocation10 + $0x30] ss:$8 sps:$4 sm:$0xff]  }
 0x39d   : > { %3632 = vmatpush3.xpose.msk.msra.mxu0 %vm729_vm1, %v5204_v47 }
 0x39e   : > { %3633 = vmatprep.subr.msk.mxu0 %vm729_vm1, %v5210_v48 }
 0x39f   : > { %3666 = vmatpush3.xpose.msk.msra.mxu1 %vm729_vm1, %v5204_v47  ;;  %v3993_v47 = vld [vmem:[#allocation10 + $0x24] ss:$8 sps:$4 sm:$0xff]  }
 0x3a0   : > { %3667 = vmatprep.subr.msk.mxu1 %vm729_vm1, %v5210_v48  ;;  %v3991_v48 = vld [vmem:[#allocation10 + $0x20] ss:$8 sps:$4 sm:$0xff]  }
 0x3a1   : > { %3634 = vmatpush3.xpose.msk.msra.mxu0 %vm729_vm1, %v5217_v49 }
 0x3a2   : > { %3635 = vmatprep.subr.msk.mxu0 %vm729_vm1, %v5224_v50 }
 0x3a3   : > { %3668 = vmatpush3.xpose.msk.msra.mxu1 %vm729_vm1, %v5217_v49  ;;  %v3996_v49 = vld [vmem:[#allocation10 + $0x14] ss:$8 sps:$4 sm:$0xff]  }
 0x3a4   : > { %3669 = vmatprep.subr.msk.mxu1 %vm729_vm1, %v5224_v50  ;;  %v3999_v50 = vld [vmem:[#allocation9 + $0x74] ss:$8 sps:$4 sm:$0xff]  }
 0x3a5   : > { %3636 = vmatpush3.xpose.msk.msra.mxu0 %vm729_vm1, %v5231_v51 }
 0x3a6   : > { %3637 = vmatprep.subr.msk.mxu0 %vm729_vm1, %v5238_v52 }
 0x3a7   : > { %3670 = vmatpush3.xpose.msk.msra.mxu1 %vm729_vm1, %v5231_v51  ;;  %v3994_v51 = vld [vmem:[#allocation10 + $0x10] ss:$8 sps:$4 sm:$0xff]  }
 0x3a8   : > { %3671 = vmatprep.subr.msk.mxu1 %vm729_vm1, %v5238_v52  ;;  %v3997_v52 = vld [vmem:[#allocation9 + $0x70] ss:$8 sps:$4 sm:$0xff]  }
 0x3a9   : > { %3638 = vmatpush3.xpose.msk.msra.mxu0 %vm729_vm1, %v5245_v53 }
 0x3aa   : > { %3639 = vmatprep.subr.msk.mxu0 %vm729_vm1, %v5252_v54 }
 0x3ab   : > { %3672 = vmatpush3.xpose.msk.msra.mxu1 %vm729_vm1, %v5245_v53  ;;  %v4002_v53 = vld [vmem:[#allocation10 + $0x4] ss:$8 sps:$4 sm:$0xff]  }
 0x3ac   : > { %3673 = vmatprep.subr.msk.mxu1 %vm729_vm1, %v5252_v54  ;;  %v4005_v54 = vld [vmem:[#allocation9 + $0x64] ss:$8 sps:$4 sm:$0xff]  }
 0x3ad   : > { %3640 = vmatpush3.xpose.msk.msra.mxu0 %vm729_vm1, %v5259_v55 }
 0x3ae   : > { %2194 = vmatprep.subr.bf16.mxu0 %v3978_v34  ;;  %v4054_v34 = vld [vmem:[#allocation9 + $0xd0] ss:$8 sps:$4 sm:$0xff]  }
 0x3af   : > { %3674 = vmatpush3.xpose.msk.msra.mxu1 %vm729_vm1, %v5259_v55  ;;  %v4000_v55 = vld [vmem:[#allocation10] ss:$8 sps:$4 sm:$0xff]  }
 0x3b0   : > { %2435 = vmatprep.subr.bf16.mxu1 %v3999_v50  ;;  %v4075_v50 = vld [vmem:[#allocation9 + $0x1c0] ss:$8 sps:$4 sm:$0xff]  }
 0x430   : > { %v3571_v31 = vpop.f32.mrf.mxu0 }
 0x432   : > { %v3572_v35 = vpop.f32.mrf.mxu0  ;;  %v3606_v21 = vpop.f32.mrf.mxu1 }
 0x433   : > { %v3573_v22 = vadd.f32 %v3572_v35, %v3571_v31  ;;  %v4038_v31 = vld [vmem:[#allocation9 + $0x4] ss:$8 sps:$4 sm:$0xff]  }
 0x434   : > { %v3607_v23 = vpop.f32.mrf.mxu1  ;;  %v4041_v35 = vld [vmem:[#allocation9 + $0x124] ss:$8 sps:$4 sm:$0xff]  }
 0x435   : > { %v1713_v24 = vmul.f32 0.0009765625, %v3573_v22  ;;  %v3608_v25 = vadd.f32 %v3607_v23, %v3606_v21  ;;  %v4036_v21 = vld [vmem:[#allocation9] ss:$8 sps:$4 sm:$0xff]   ;;  %v4044_v23 = vld [vmem:[#allocation9 + $0xf4] ss:$8 sps:$4 sm:$0xff]  }
 0x436   : > { %v4039_v22 = vld [vmem:[#allocation9 + $0x120] ss:$8 sps:$4 sm:$0xff]  }
 0x437   : > { %v1714_v26 = vmul.f32 0.0009765625, %v3608_v25  ;;  %v1715_v27 = vmul.f32 %v1713_v24, %v1713_v24  ;;  %3641 = vmatprep.mubr.msk.f32.mxu0 %vm729_vm1, %v1713_v24  ;;  %v4042_v25 = vld [vmem:[#allocation9 + $0xf0] ss:$8 sps:$4 sm:$0xff]  }
 0x438   : > { %3642 = vmatmul.mubr.msk.f32.vlgmr.msra.gmra.mxu0 %vm729_vm1, %v1713_v24  ;;  %v4047_v24 = vld [vmem:[#allocation9 + $0x114] ss:$8 sps:$4 sm:$0xff]  }
 0x439   : > { %v1716_v28 = vsub.f32 %v1714_v26, %v1715_v27  ;;  %2226 = vmatprep.mubr.bf16.mxu0 %v5569_v29  ;;  %2195 = vmatpush1.bf16.msra.mxu0 %v3976_v37  ;;  %v4045_v26 = vld [vmem:[#allocation9 + $0x110] ss:$8 sps:$4 sm:$0xff]   ;;  %v4050_v27 = vld [vmem:[#allocation9 + $0xe4] ss:$8 sps:$4 sm:$0xff]   ;;  %v4048_v29 = vld [vmem:[#allocation9 + $0xe0] ss:$8 sps:$4 sm:$0xff]  }
 0x43a   : > { %2196 = vmatprep.subr.bf16.mxu0 %v3981_v39  ;;  %v4057_v37 = vld [vmem:[#allocation9 + $0x1f0] ss:$8 sps:$4 sm:$0xff]   ;;  %v4062_v39 = vld [vmem:[#allocation9 + $0xc4] ss:$8 sps:$4 sm:$0xff]  }
 0x43b   : > { %v1717_v30 = vmax.f32 %v1716_v28, 0.0  ;;  %v4053_v28 = vld [vmem:[#allocation9 + $0x104] ss:$8 sps:$4 sm:$0xff]  }
 0x43d   : > { %v1718_v32 = vadd.f32 1e-05, %v1717_v30  ;;  %2197 = vmatpush1.bf16.msra.mxu0 %v3979_v40  ;;  %v4051_v30 = vld [vmem:[#allocation9 + $0x100] ss:$8 sps:$4 sm:$0xff]   ;;  %v4065_v40 = vld [vmem:[#allocation9 + $0x1e4] ss:$8 sps:$4 sm:$0xff]  }
 0x43e   : > { %2198 = vmatprep.subr.bf16.mxu0 %v3984_v41  ;;  %v4060_v41 = vld [vmem:[#allocation9 + $0xc0] ss:$8 sps:$4 sm:$0xff]  }
 0x43f   : > { %4158 = vrsqrt.f32 %v1718_v32  ;;  %v4056_v32 = vld [vmem:[#allocation9 + $0xd4] ss:$8 sps:$4 sm:$0xff]  }
 0x441   : > { %2199 = vmatpush1.bf16.msra.mxu0 %v3982_v42  ;;  %v4063_v42 = vld [vmem:[#allocation9 + $0x1e0] ss:$8 sps:$4 sm:$0xff]  }
 0x442   : > { %2200 = vmatprep.subr.bf16.mxu0 %v3987_v43  ;;  %v4068_v43 = vld [vmem:[#allocation9 + $0xb4] ss:$8 sps:$4 sm:$0xff]  }
 0x445   : > { %2201 = vmatpush1.bf16.msra.mxu0 %v3985_v44  ;;  %v4071_v44 = vld [vmem:[#allocation9 + $0x1d4] ss:$8 sps:$4 sm:$0xff]  }
 0x446   : > { %2202 = vmatprep.subr.bf16.mxu0 %v3990_v45  ;;  %v4066_v45 = vld [vmem:[#allocation9 + $0xb0] ss:$8 sps:$4 sm:$0xff]  }
 0x449   : > { %2203 = vmatpush1.bf16.msra.mxu0 %v3988_v46  ;;  %v4069_v46 = vld [vmem:[#allocation9 + $0x1d0] ss:$8 sps:$4 sm:$0xff]  }
 0x44a   : > { %2204 = vmatprep.subr.bf16.mxu0 %v3993_v47  ;;  %v4074_v47 = vld [vmem:[#allocation9 + $0xa4] ss:$8 sps:$4 sm:$0xff]  }
 0x44c   : > { %v4159_v33 = vpop.eup %4158 }
 0x44d   : > { %3675 = vmatprep.mubr.msk.f32.mxu1 %vm729_vm1, %v4159_v33  ;;  %2205 = vmatpush1.bf16.msra.mxu0 %v3991_v48  ;;  %v4077_v48 = vld [vmem:[#allocation9 + $0x1c4] ss:$8 sps:$4 sm:$0xff]  }
 0x44e   : > { %3676 = vmatmul.mubr.msk.f32.vlgmr.msra.gmra.mxu1 %vm729_vm1, %v4159_v33  ;;  %2206 = vmatprep.subr.bf16.mxu0 %v3996_v49  ;;  %v4059_v33 = vld [vmem:[#allocation9 + $0x1f4] ss:$8 sps:$4 sm:$0xff]   ;;  %v4072_v49 = vld [vmem:[#allocation9 + $0xa0] ss:$8 sps:$4 sm:$0xff]  }
 0x44f   : > { %2436 = vmatpush1.bf16.msra.mxu1 %v3997_v52  ;;  %v4080_v52 = vld [vmem:[#allocation9 + $0x94] ss:$8 sps:$4 sm:$0xff]  }
 0x450   : > { %2437 = vmatprep.subr.bf16.mxu1 %v4005_v54  ;;  %v5571_v54 = vmov 0.0  }
 0x451   : > { %2207 = vmatpush1.bf16.msra.mxu0 %v3994_v51  ;;  %v5570_v51 = vlaneseq }
 0x452   : > { %2208 = vmatprep.subr.bf16.mxu0 %v4002_v53  ;;  %v4083_v53 = vld [vmem:[#allocation9 + $0x1b4] ss:$8 sps:$4 sm:$0xff]  }
 0x453   : > { %2438 = vmatpush1.bf16.msra.mxu1 %v4003_v3  ;;  %vm2055_vm3 = vcmp.lt.s32.totalorder %v5570_v51, 256  ;;  %v4081_v3 = vld [vmem:[#allocation9 + $0x1b0] ss:$8 sps:$4 sm:$0xff]  }
 0x454   : > { %2439 = vmatprep.subr.bf16.mxu1 %v4008_v4  ;;  %2057 = vst.msk [vmem:[#allocation3] ss:$8 sm:$0x3] %vm2055_vm3, %v5571_v54  ;;  %2060 = vst.msk [vmem:[#allocation3 + $0x21] ss:$8 sm:$0x3] %vm2055_vm3, %v5571_v54 }
 0x455   : > { %2209 = vmatpush1.bf16.msra.mxu0 %v4000_v55  ;;  %v4078_v55 = vld [vmem:[#allocation9 + $0x90] ss:$8 sps:$4 sm:$0xff]   ;;  %v4086_v4 = vld [vmem:[#allocation9 + $0x84] ss:$8 sps:$4 sm:$0xff]  }
 0x456   : > { %2712 = vmatprep.subr.bf16.mxu0 %v4011_v5  ;;  %v4089_v5 = vld [vmem:[#allocation9 + $0x1a4] ss:$8 sps:$4 sm:$0xff]  }
 0x457   : > { %2440 = vmatpush1.bf16.msra.mxu1 %v4006_v8  ;;  %v4084_v8 = vld [vmem:[#allocation9 + $0x80] ss:$8 sps:$4 sm:$0xff]  }
 0x458   : > { %2227 = vmatmul.mubr.bf16.vlgmr.msra.gmra.mxu0 %v2085_v12  ;;  %2441 = vmatprep.subr.bf16.mxu1 %v4014_v13  ;;  %v4095_v12 = vld [vmem:[#allocation9 + $0x274] ss:$8 sps:$4 sm:$0xff]   ;;  %v4098_v13 = vld [vmem:[#allocation9 + $0x184] ss:$8 sps:$4 sm:$0xff]  }
 0x459   : > { %2713 = vmatpush1.bf16.msra.mxu0 %v4009_v9  ;;  %v4087_v9 = vld [vmem:[#allocation9 + $0x1a0] ss:$8 sps:$4 sm:$0xff]  }
 0x45a   : > { %2714 = vmatprep.subr.bf16.mxu0 %v4017_v14  ;;  %v4096_v14 = vld [vmem:[#allocation9 + $0x180] ss:$8 sps:$4 sm:$0xff]  }
 0x45b   : > { %2442 = vmatpush1.bf16.msra.mxu1 %v4012_v15  ;;  %v1538_v15 = vld [vmem:[%s5523_s9] sm:$0x3] }
 0x45c   : > { %2443 = vmatprep.subr.bf16.mxu1 %v4020_v17  ;;  %v4369_v17 = vmov 1966171168  }
 0x45d   : > { %2715 = vmatpush1.bf16.msra.mxu0 %v4015_v16  ;;  %v1968_v16 = vrot.slane %v1538_v15, %v4988_v38 }
 0x45e   : > { %2716 = vmatprep.subr.bf16.mxu0 %v4023_v18  ;;  %v1983_v18 = vunpack.c.l.s4 %v4369_v17 }
 0x45f   : > { %2444 = vmatpush1.bf16.msra.mxu1 %v4018_v19  ;;  %v1972_v19 = vrot.slane %v1538_v15, %v5275_v60 }
 0x460   : > { %2445 = vmatprep.subr.bf16.mxu1 %v4026_v56 }
 0x461   : > { %2717 = vmatpush1.bf16.msra.mxu0 %v4021_v7 }
 0x462   : > { %2718 = vmatprep.subr.bf16.mxu0 %v4029_v58 }
 0x463   : > { %2446 = vmatpush1.bf16.msra.mxu1 %v4024_v59  ;;  %v1984_v59 = vunpack.c.0.s8 %v1983_v18 }
 0x464   : > { %2447 = vmatprep.subr.bf16.mxu1 %v4032_v6 }
 0x465   : > { %2719 = vmatpush1.bf16.msra.mxu0 %v4027_v61 }
 0x466   : > { %2720 = vmatprep.subr.bf16.mxu0 %v4035_v1 }
 0x467   : > { %2448 = vmatpush1.bf16.msra.mxu1 %v4030_v63 }
 0x468   : > { %2449 = vmatprep.subr.bf16.mxu1 %v4038_v31  ;;  %v1987_v31 = vsub.s32 %v1984_v59, %v4982_v36 }
 0x469   : > { %2721 = vmatpush1.bf16.msra.mxu0 %v4033_v2 }
 0x46a   : > { %2722 = vmatprep.subr.bf16.mxu0 %v4041_v35 }
 0x46b   : > { %2450 = vmatpush1.bf16.msra.mxu1 %v4036_v21 }
 0x46c   : > { %2451 = vmatprep.subr.bf16.mxu1 %v4044_v23  ;;  %v1539_v23 = vld [vmem:[%s5524_s10] sm:$0x3] }
 0x46d   : > { %2723 = vmatpush1.bf16.msra.mxu0 %v4039_v22 }
 0x46e   : > { %2724 = vmatprep.subr.bf16.mxu0 %v4047_v24 }
 0x46f   : > { %2452 = vmatpush2.bf16.msra.mxu1 %v4042_v25 }
 0x470   : > { %2453 = vmatprep.subr.bf16.mxu1 %v4050_v27 }
 0x471   : > { %2725 = vmatpush1.bf16.msra.mxu0 %v4045_v26 }
 0x472   : > { %2726 = vmatprep.subr.bf16.mxu0 %v4053_v28 }
 0x473   : > { %2454 = vmatpush2.bf16.msra.mxu1 %v4048_v29 }
 0x474   : > { %2455 = vmatprep.subr.bf16.mxu1 %v4056_v32 }
 0x475   : > { %2727 = vmatpush1.bf16.msra.mxu0 %v4051_v30 }
 0x476   : > { %2728 = vmatprep.subr.bf16.mxu0 %v4059_v33 }
 0x477   : > { %2456 = vmatpush2.bf16.msra.mxu1 %v4054_v34 }
 0x478   : > { %2457 = vmatprep.subr.bf16.mxu1 %v4062_v39 }
 0x479   : > { %2729 = vmatpush2.bf16.msra.mxu0 %v4057_v37 }
 0x47a   : > { %2730 = vmatprep.subr.bf16.mxu0 %v4065_v40 }
 0x47b   : > { %2458 = vmatpush2.bf16.msra.mxu1 %v4060_v41 }
 0x47c   : > { %2459 = vmatprep.subr.bf16.mxu1 %v4068_v43 }
 0x47d   : > { %2731 = vmatpush2.bf16.msra.mxu0 %v4063_v42 }
 0x47e   : > { %2732 = vmatprep.subr.bf16.mxu0 %v4071_v44 }
 0x47f   : > { %2460 = vmatpush2.bf16.msra.mxu1 %v4066_v45 }
 0x480   : > { %2461 = vmatprep.subr.bf16.mxu1 %v4074_v47 }
 0x481   : > { %2733 = vmatpush2.bf16.msra.mxu0 %v4069_v46 }
 0x482   : > { %2734 = vmatprep.subr.bf16.mxu0 %v4077_v48 }
 0x483   : > { %2462 = vmatpush2.bf16.msra.mxu1 %v4072_v49 }
 0x484   : > { %2463 = vmatprep.subr.bf16.mxu1 %v4080_v52 }
 0x485   : > { %2735 = vmatpush2.bf16.msra.mxu0 %v4075_v50 }
 0x486   : > { %2736 = vmatprep.subr.bf16.mxu0 %v4083_v53 }
 0x487   : > { %2464 = vmatpush2.bf16.msra.mxu1 %v4078_v55 }
 0x488   : > { %2465 = vmatprep.subr.bf16.mxu1 %v4086_v4 }
 0x489   : > { %2737 = vmatpush2.bf16.msra.mxu0 %v4081_v3 }
 0x48a   : > { %2738 = vmatprep.subr.bf16.mxu0 %v4089_v5 }
 0x48b   : > { %2466 = vmatpush2.bf16.msra.mxu1 %v4084_v8 }
 0x48c   : > { %2973 = vmatprep.subr.bf16.mxu1 %v4095_v12 }
 0x48d   : > { %2739 = vmatpush2.bf16.msra.mxu0 %v4087_v9 }
 0x48e   : > { %2740 = vmatprep.subr.bf16.mxu0 %v4092_v11 }
 0x491   : > { %2741 = vmatpush2.bf16.msra.mxu0 %v4090_v10 }
 0x492   : > { %2742 = vmatprep.subr.bf16.mxu0 %v4098_v13 }
 0x495   : > { %2743 = vmatpush2.bf16.msra.mxu0 %v4096_v14 }
 0x4f8   : > { %v1885_v7 = vpop.f32.mrf.mxu0 }
 0x4fa   : > { %v1887_v1 = vpop.f32.mrf.mxu0 }
 0x50e   : > { %v1959_v56 = vpop.f32.mrf.mxu1 }
 0x50f   : > { %v1975_v58 = vmul.f32 %v1968_v16, %v1959_v56 }
 0x510   : > { %v1961_v61 = vpop.f32.mrf.mxu1 }
 0x511   : > { %v1976_v6 = vmul.f32 %v1972_v19, %v1961_v61  ;;  %v1977_v63 = vmul.f32 %v1975_v58, %v1885_v7  ;;  %v2001_v22 = vrot.slane %v1975_v58, %v4988_v38  ;;  %v4093_v19 = vld [vmem:[#allocation9 + $0x270] ss:$8 sps:$4 sm:$0xff]   ;;  %v4101_v58 = vld [vmem:[#allocation9 + $0x264] ss:$8 sps:$4 sm:$0xff]  }
 0x513   : > { %v1978_v2 = vmul.f32 %v1976_v6, %v1887_v1  ;;  %v2005_v25 = vrot.slane %v1976_v6, %v4988_v38  ;;  %v2006_v27 = vmul.f32 %v2001_v22, %v5281_v20  ;;  %v2008_v28 = vmul.f32 %v2001_v22, %v5285_v57 }
 0x515   : > { %v1981_v35 = vcombine.low %v1977_v63, %v1978_v2  ;;  %v2007_v29 = vmul.f32 %v2005_v25, %v5283_v0  ;;  %v2009_v36 = vmul.f32 %v2005_v25, %v5293_v62 }
 0x517   : > { %v1988_v21 = vrot.slane %v1981_v35, %v1987_v31 }
 0x519   : > { %v1995_v24 = vrot.slane %v1988_v21, %v1987_v31 }
 0x51b   : > { %v1997_v26 = vsub.f32 %v1539_v23, %v1995_v24 }
 0x51d   : > { %v2014_v30 = vrot.slane %v1997_v26, %v4988_v38  ;;  %v2018_v32 = vrot.slane %v1997_v26, %v5275_v60  ;;  %v4099_v26 = vld [vmem:[#allocation9 + $0x260] ss:$8 sps:$4 sm:$0xff]  }
 0x51f   : > { %v2021_v33 = vadd.f32 %v2014_v30, %v2006_v27  ;;  %v2022_v34 = vadd.f32 %v2018_v32, %v2007_v29  ;;  %v2023_v37 = vadd.f32 %v2014_v30, %v2008_v28  ;;  %v2024_v39 = vadd.f32 %v2018_v32, %v2009_v36  ;;  %v4104_v30 = vld [vmem:[#allocation9 + $0x254] ss:$8 sps:$4 sm:$0xff]  }
 0x521   : > { %v3348_v40 = vmul.f32 -1.442695, %v2021_v33  ;;  %v3349_v41 = vmul.f32 -1.442695, %v2022_v34  ;;  %v3350_v42 = vmul.f32 -1.442695, %v2023_v37 }
 0x522   : > { %v3351_v43 = vmul.f32 -1.442695, %v2024_v39 }
 0x523   : > { %4160 = vpow2.f32 %v3348_v40  ;;  %v4102_v40 = vld [vmem:[#allocation9 + $0x250] ss:$8 sps:$4 sm:$0xff]  }
 0x524   : > { %4162 = vpow2.f32 %v3349_v41 }
 0x525   : > { %4164 = vpow2.f32 %v3350_v42  ;;  %v4107_v42 = vld [vmem:[#allocation9 + $0x244] ss:$8 sps:$4 sm:$0xff]  }
 0x526   : > { %4166 = vpow2.f32 %v3351_v43  ;;  %v4105_v43 = vld [vmem:[#allocation9 + $0x240] ss:$8 sps:$4 sm:$0xff]  }
 0x530   : > { %v4161_v20 = vpop.eup %4160 }
 0x531   : > { %v4163_v0 = vpop.eup %4162  ;;  %v2037_v57 = vadd.f32 1.0, %v4161_v20  ;;  %v4110_v20 = vld [vmem:[#allocation9 + $0x234] ss:$8 sps:$4 sm:$0xff]  }
 0x532   : > { %v4165_v62 = vpop.eup %4164  ;;  %v2038_v44 = vadd.f32 1.0, %v4163_v0  ;;  %v4108_v0 = vld [vmem:[#allocation9 + $0x230] ss:$8 sps:$4 sm:$0xff]  }
 0x533   : > { %v4167_v45 = vpop.eup %4166  ;;  %v2039_v46 = vadd.f32 1.0, %v4165_v62  ;;  %4168 = vrcp.f32 %v2037_v57  ;;  %v4113_v57 = vld [vmem:[#allocation9 + $0x224] ss:$8 sps:$4 sm:$0xff]   ;;  %v4111_v62 = vld [vmem:[#allocation9 + $0x220] ss:$8 sps:$4 sm:$0xff]  }
 0x534   : > { %v2040_v47 = vadd.f32 1.0, %v4167_v45  ;;  %4170 = vrcp.f32 %v2038_v44  ;;  %v4116_v44 = vld [vmem:[#allocation9 + $0x214] ss:$8 sps:$4 sm:$0xff]   ;;  %v4114_v45 = vld [vmem:[#allocation9 + $0x210] ss:$8 sps:$4 sm:$0xff]  }
 0x535   : > { %4172 = vrcp.f32 %v2039_v46  ;;  %v4119_v46 = vld [vmem:[#allocation9 + $0x204] ss:$8 sps:$4 sm:$0xff]  }
 0x536   : > { %4174 = vrcp.f32 %v2040_v47  ;;  %v4117_v47 = vld [vmem:[#allocation9 + $0x200] ss:$8 sps:$4 sm:$0xff]  }
 0x540   : > { %v4169_v48 = vpop.eup %4168 }
 0x541   : > { %v4171_v49 = vpop.eup %4170  ;;  %v2049_v50 = vmul.f32 %v4169_v48, %v2021_v33  ;;  %v4122_v48 = vld [vmem:[#allocation9 + $0x2f4] ss:$8 sps:$4 sm:$0xff]  }
 0x542   : > { %v4173_v51 = vpop.eup %4172  ;;  %v2050_v52 = vmul.f32 %v4171_v49, %v2022_v34  ;;  %v4120_v49 = vld [vmem:[#allocation9 + $0x2f0] ss:$8 sps:$4 sm:$0xff]  }
 0x543   : > { %v4175_v53 = vpop.eup %4174  ;;  %v2051_v54 = vmul.f32 %v4173_v51, %v2023_v37  ;;  %v2067_v55 = vrot.slane %v2049_v50, 7  ;;  %v4125_v50 = vld [vmem:[#allocation9 + $0x2e4] ss:$8 sps:$4 sm:$0xff]   ;;  %v4123_v51 = vld [vmem:[#allocation9 + $0x2e0] ss:$8 sps:$4 sm:$0xff]  }
 0x544   : > { %v2052_v3 = vmul.f32 %v4175_v53, %v2024_v39  ;;  %v2068_v4 = vrot.slane %v2050_v52, 7  ;;  %v4128_v52 = vld [vmem:[#allocation9 + $0x2d4] ss:$8 sps:$4 sm:$0xff]   ;;  %v4126_v53 = vld [vmem:[#allocation9 + $0x2d0] ss:$8 sps:$4 sm:$0xff]  }
 0x545   : > { %v2069_v5 = vrot.slane %v2051_v54, 7  ;;  %2079 = vst [vmem:[#allocation3] sm:$0xfe] %v2067_v55  ;;  %v4131_v54 = vld [vmem:[#allocation9 + $0x2c4] ss:$8 sps:$4 sm:$0xff]  }
 0x546   : > { %v2071_v8 = vrot.slane %v2052_v3, 7  ;;  %2080 = vst [vmem:[#allocation3 + $0x8] sm:$0xfe] %v2068_v4  ;;  %v4134_v3 = vld [vmem:[#allocation9 + $0x2b4] ss:$8 sps:$4 sm:$0xff]  }
 0x547   : > { %v5452_v9 = vsel %vm2066_vm4, %v2067_v55, %v2069_v5  ;;  %2083 = vst [vmem:[#allocation3 + $0x20] sm:$0x1] %v2069_v5  ;;  %v4129_v55 = vld [vmem:[#allocation9 + $0x2c0] ss:$8 sps:$4 sm:$0xff]   ;;  %v4137_v5 = vld [vmem:[#allocation9 + $0x2a4] ss:$8 sps:$4 sm:$0xff]  }
 0x548   : > { %v2072_v10 = vsel %vm2066_vm4, %v2068_v4, %v2071_v8  ;;  %2084 = vst [vmem:[#allocation3 + $0x28] sm:$0x1] %v2071_v8  ;;  %v4132_v4 = vld [vmem:[#allocation9 + $0x2b0] ss:$8 sps:$4 sm:$0xff]   ;;  %v4135_v8 = vld [vmem:[#allocation9 + $0x2a0] ss:$8 sps:$4 sm:$0xff]  }
 0x54c   : > { %v2237_v11 = vld [vmem:[#allocation3] sm:$0xff] }
 0x54d   : > { %v2482_v12 = vld [vmem:[#allocation3] sm:$0xfe]  ;;  %v2238_v13 = vld [vmem:[#allocation3 + $0x8] sm:$0xff]  ;;  %v2241_v14 = vpack.c.bf16 %v5452_v9, %v2237_v11 }
 0x54e   : > { %v2483_v15 = vld [vmem:[#allocation3 + $0x8] sm:$0xfe]  ;;  %v2488_v17 = vpack.c.bf16 %v5452_v9, %v2482_v12  ;;  %v2242_v18 = vpack.c.bf16 %v2072_v10, %v2238_v13  ;;  %v2486_v59 = vld [vmem:[#allocation3 + $0x20] sm:$0x1]  ;;  %v2759_v11 = vld [vmem:[#allocation3] sm:$0xfc] }
 0x54f   : > { %v2760_v16 = vld [vmem:[#allocation3 + $0x8] sm:$0xfc]  ;;  %v2489_v7 = vpack.c.bf16 %v2072_v10, %v2483_v15  ;;  %v2762_v61 = vld [vmem:[#allocation3 + $0x28] sm:$0x3]  ;;  %v2490_v1 = vpack.c.bf16 %v2486_v59, %v2486_v59  ;;  %v2761_v12 = vld [vmem:[#allocation3 + $0x20] sm:$0x3]  ;;  %v2763_v15 = vpack.c.bf16 %v5452_v9, %v2759_v11 }
 0x550   : > { %v2764_v56 = vpack.c.bf16 %v2072_v10, %v2760_v16  ;;  %v2487_v6 = vld [vmem:[#allocation3 + $0x28] sm:$0x1]  ;;  %v2529_v63 = vshll.u32 %v2488_v17, 16  ;;  %2467 = vmatprep.mubr.bf16.mxu1 %v2242_v18  ;;  %v2766_v2 = vpack.c.bf16 %v2762_v61, %v2762_v61  ;;  %v2527_v22 = vshrl.u32 %v2488_v17, 16  ;;  %v4140_v10 = vld [vmem:[#allocation9 + $0x294] ss:$8 sps:$4 sm:$0xff]  }
 0x551   : > { %v2491_v35 = vpack.c.bf16 %v2487_v6, %v2487_v6  ;;  %2468 = vmatmul.mubr.bf16.vlgmr.msra.gmra.mxu1 %v2241_v14  ;;  %v2541_v21 = vshll.u32 %v2489_v7, 16  ;;  %v2534_v24 = vshll.u32 %v2490_v1, 16  ;;  %v2539_v28 = vshrl.u32 %v2489_v7, 16  ;;  %v4138_v13 = vld [vmem:[#allocation9 + $0x290] ss:$8 sps:$4 sm:$0xff]  }
 0x552   : > { %v2808_v31 = vrot.slane %v2764_v56, 1  ;;  %v2531_v23 = vrot.slane %v2529_v63, 1  ;;  %2974 = vmatpush1.bf16.msra.mxu1 %v4093_v19  ;;  %v2809_v25 = vrot.slane %v2766_v2, 1  ;;  %v4143_v14 = vld [vmem:[#allocation9 + $0x284] ss:$8 sps:$4 sm:$0xff]   ;;  %v2765_v16 = vpack.c.bf16 %v2761_v12, %v2761_v12  ;;  %v2228_v56 = vpop.f32.mrf.mxu0 }
 0x553   : > { %v2546_v27 = vshll.u32 %v2491_v35, 16  ;;  %2975 = vmatprep.subr.bf16.mxu1 %v4101_v58  ;;  %v2543_v29 = vrot.slane %v2541_v21, 1  ;;  %v2536_v33 = vrot.slane %v2534_v24, 1  ;;  %v4141_v17 = vld [vmem:[#allocation9 + $0x280] ss:$8 sps:$4 sm:$0xff]   ;;  %v2805_v18 = vrot.slane %v2763_v15, 1 }
 0x554   : > { %v2532_v36 = vor.u32 %v2531_v23, %v2527_v22  ;;  %v2810_v32 = vsel %vm2804_vm5, %v2808_v31, %v2809_v25  ;;  %v2806_v19 = vrot.slane %v2765_v16, 1  ;;  %v2230_v58 = vpop.f32.mrf.mxu0  ;;  %v2102_v61 = vld [vmem:[%s5527_s13] sm:$0x3] }
 0x555   : > { %3005 = vmatprep.mubr.bf16.mxu1 %v2810_v32  ;;  %v2544_v34 = vor.u32 %v2543_v29, %v2539_v28  ;;  %v2548_v37 = vrot.slane %v2546_v27, 1  ;;  %v2107_v1 = vrot.slane %v2102_v61, %v4988_v38  ;;  %v2111_v35 = vrot.slane %v2102_v61, %v5275_v60 }
 0x556   : > { %2976 = vmatpush1.bf16.msra.mxu1 %v4099_v26  ;;  %v2537_v39 = vsel %vm2525_vm6, %v2532_v36, %v2536_v33  ;;  %v2807_v7 = vsel %vm2804_vm5, %v2805_v18, %v2806_v19  ;;  %v2232_v59 = vpop.f32.mrf.mxu0 }
 0x557   : > { %v2549_v41 = vsel %vm2525_vm6, %v2544_v34, %v2548_v37  ;;  %2977 = vmatprep.subr.bf16.mxu1 %v4104_v30  ;;  %v2229_v31 = vadd.f32 %v2228_v56, %v2107_v1  ;;  %v2231_v23 = vadd.f32 %v2230_v58, %v2111_v35  ;;  %v2233_v27 = vadd.f32 %v2232_v59, %v2107_v1 }
 0x558   : > { %2744 = vmatprep.mubr.bf16.mxu0 %v2549_v41  ;;  %v2234_v9 = vpop.f32.mrf.mxu0 }
 0x559   : > { %2745 = vmatmul.mubr.bf16.vlgmr.msra.gmra.mxu0 %v2537_v39  ;;  %v2235_v30 = vadd.f32 %v2234_v9, %v2111_v35 }
 0x55a   : > { %2978 = vmatpush1.bf16.msra.mxu1 %v4102_v40 }
 0x55b   : > { %2979 = vmatprep.subr.bf16.mxu1 %v4107_v42 }
 0x55e   : > { %2980 = vmatpush1.bf16.msra.mxu1 %v4105_v43 }
 0x55f   : > { %2981 = vmatprep.subr.bf16.mxu1 %v4110_v20 }
 0x562   : > { %2982 = vmatpush1.bf16.msra.mxu1 %v4108_v0 }
 0x563   : > { %2983 = vmatprep.subr.bf16.mxu1 %v4113_v57 }
 0x566   : > { %2984 = vmatpush1.bf16.msra.mxu1 %v4111_v62 }
 0x567   : > { %2985 = vmatprep.subr.bf16.mxu1 %v4116_v44 }
 0x56a   : > { %2986 = vmatpush1.bf16.msra.mxu1 %v4114_v45 }
 0x56b   : > { %2987 = vmatprep.subr.bf16.mxu1 %v4119_v46 }
 0x56e   : > { %2988 = vmatpush1.bf16.msra.mxu1 %v4117_v47 }
 0x56f   : > { %2989 = vmatprep.subr.bf16.mxu1 %v4122_v48 }
 0x572   : > { %2990 = vmatpush2.bf16.msra.mxu1 %v4120_v49 }
 0x573   : > { %2991 = vmatprep.subr.bf16.mxu1 %v4125_v50 }
 0x576   : > { %2992 = vmatpush2.bf16.msra.mxu1 %v4123_v51 }
 0x577   : > { %2993 = vmatprep.subr.bf16.mxu1 %v4128_v52 }
 0x57a   : > { %2994 = vmatpush2.bf16.msra.mxu1 %v4126_v53 }
 0x57b   : > { %2995 = vmatprep.subr.bf16.mxu1 %v4131_v54 }
 0x57e   : > { %2996 = vmatpush2.bf16.msra.mxu1 %v4129_v55 }
 0x57f   : > { %2997 = vmatprep.subr.bf16.mxu1 %v4134_v3 }
 0x582   : > { %2998 = vmatpush2.bf16.msra.mxu1 %v4132_v4 }
 0x583   : > { %2999 = vmatprep.subr.bf16.mxu1 %v4137_v5 }
 0x586   : > { %3000 = vmatpush2.bf16.msra.mxu1 %v4135_v8 }
 0x587   : > { %3001 = vmatprep.subr.bf16.mxu1 %v4140_v10 }
 0x58a   : > { %3002 = vmatpush2.bf16.msra.mxu1 %v4138_v13 }
 0x58b   : > { %3003 = vmatprep.subr.bf16.mxu1 %v4143_v14 }
 0x58e   : > { %3004 = vmatpush2.bf16.msra.mxu1 %v4141_v17 }
 0x591   : > { %3006 = vmatmul.mubr.bf16.vlgmr.msra.gmra.mxu1 %v2807_v7 }
 0x611   : > { %v2469_v6 = vpop.f32.mrf.mxu1 }
 0x612   : > { %v2478_v24 = vadd.f32 %v2469_v6, %v2229_v31 }
 0x613   : > { %v2471_v63 = vpop.f32.mrf.mxu1 }
 0x614   : > { %v2479_v28 = vadd.f32 %v2471_v63, %v2231_v23 }
 0x615   : > { %v2473_v21 = vpop.f32.mrf.mxu1 }
 0x616   : > { %v2480_v32 = vadd.f32 %v2473_v21, %v2233_v27 }
 0x617   : > { %v2475_v25 = vpop.f32.mrf.mxu1 }
 0x618   : > { %v2481_v37 = vadd.f32 %v2475_v25, %v2235_v30 }
 0x619   : > { %v2746_v2 = vpop.f32.mrf.mxu0 }
 0x61a   : > { %v2755_v29 = vadd.f32 %v2746_v2, %v2478_v24 }
 0x61b   : > { %v2748_v22 = vpop.f32.mrf.mxu0 }
 0x61c   : > { %v2756_v38 = vadd.f32 %v2748_v22, %v2479_v28 }
 0x61d   : > { %v2750_v26 = vpop.f32.mrf.mxu0 }
 0x61e   : > { %v2757_v39 = vadd.f32 %v2750_v26, %v2480_v32 }
 0x61f   : > { %v2752_v34 = vpop.f32.mrf.mxu0 }
 0x620   : > { %v2758_v42 = vadd.f32 %v2752_v34, %v2481_v37 }
 0x651   : > { %v3007_v36 = vpop.f32.mrf.mxu1 }
 0x652   : > { %v3016_v33 = vadd.f32 %v3007_v36, %v2755_v29 }
 0x653   : > { %v3009_v60 = vpop.f32.mrf.mxu1 }
 0x654   : > { %3020 = vst [vmem:[%s540_s29] sm:$0xff] %v3016_v33  ;;  %v3017_v40 = vadd.f32 %v3009_v60, %v2756_v38 }
 0x655   : > { %v3011_v41 = vpop.f32.mrf.mxu1 }
 0x656   : > { %3021 = vst [vmem:[%s540_s29 + $0x8] sm:$0xff] %v3017_v40  ;;  %v3018_v43 = vadd.f32 %v3011_v41, %v2757_v39 }
 0x657   : > { %v3013_v20 = vpop.f32.mrf.mxu1 }
 0x658   : > { %3022 = vst [vmem:[%s540_s29 + $0x10] sm:$0xff] %v3018_v43  ;;  %v3019_v0 = vadd.f32 %v3013_v20, %v2758_v42 }
 0x65a   : > { %3023 = vst [vmem:[%s540_s29 + $0x18] sm:$0xff] %v3019_v0 }
 0x65b   : > { %4297 = shalt.err (!%p4294_p7)
}
 0x65c   : > { %s4298_s14 = scalar_lea.hbm %s5471_s28, 512  ;;  %s4302_s29 = scalar_lea.hbm %s5572_s24, 1024 }
 0x65d   : > { %p4299_p4 = scmp.ne.s32.totalorder %s5471_s28, %s4298_s14  ;;  %p4303_p11 = scmp.lt.s32.totalorder %s5471_s28, %s5572_s24 }
 0x65e   : > { %p4304_p13 = scmp.lt.s32.totalorder %s4302_s29, %s4298_s14 }
 0x65f   : > { %p4300_p8 = pnand %p4299_p4, %p5573_p5 }
 0x660   : > { %p4305_p12 = por %p4304_p13, %p4303_p11 }
 0x661   : > { %p4301_p6 = pneg %p4300_p8 }
 0x663   : > { %p4306_p0 = pnand %p4305_p12, %p4301_p6 }
 0x665   : > { %4309 = shalt.err (!%p4306_p0)
}
 0x666   : > { %s4371_s22 = smov 256   ;;  %s4372_s17 = smov 16  }
 0x667   : > { %3831 = dma.vmem_to_hbm [thread:$0]  (%p5573_p5), %s5466_s19, 512, %s5471_s28, %s3025_s23, %s4371_s22, %s4371_s22, %s4372_s17  }
 0x668 PF: > { %s5574_s26 = sld [smem:[#allocation17_spill]]  ;;  %p5577_p1 = scmp.ge.s32.totalorder %s4356_s16, 2 }
 0x669   : > { %s5575_s11 = sld [smem:[#allocation19_spill]] }
 0x66e   : > { %s3053_s12 = sand.u32 1, %s5574_s26  }
 0x66f   : > { %p5576_p10 = scmp.ne.s32.totalorder %s5575_s11, 0  ;;  %s3054_s14 = scalar_lea.sflag [#allocation6], %s3053_s12 }
 0x671   : > { %p3848_p2 = pnand %p5577_p1, %p5576_p10 }
 0x673   : > { %p3849_p3 = pneg %p3848_p2 }
 0x675   : > { %4339 = dma.done.wait (%p3849_p3), %s3054_s14, 512  }
 0x676   : > { %4341 = vsyncadd (%p3849_p3), %s3054_s14, 4294966784  ;;  %s5578_s15 = sld [smem:[#allocation18_spill]]  ;;  %p29_p9 = scmp.ge.s32.totalorder %s4523_s20, 4  }
 0x677   : > { %s5579_s6 = sld [smem:[#allocation20_spill]]  ;;  %s5580_s29 = smov %s4348_s30 }
 0x678   : > { %s5583_s16 = smov %s4523_s20 }
 0x679   :  { %31 = sbr.rel (!%p29_p9) target bundleno = 12 (0xc), region = 141 }
 0x67c   : > { %s5581_s30 = smov %s5578_s15 }
 0x67d   : > { %s5582_s15 = smov %s5579_s6 }
 0x67e   :  { %3059 = vsyncpa [#allocation5], 1 }
 0x67f   :  { %3061 = vsyncpa [#allocation5 + $0x1], 1 }
 0x680   :  { %3062 = vsyncpa [#allocation8], 1 }
 0x681   :  { %3063 = vsyncpa [#allocation11], 1 }
 0x682   :  { %3064 = vsyncpa [#allocation6], 1 }
 0x683   :  { %3066 = vsyncpa [#allocation6 + $0x1], 1 }

</bundles_post_ra>
